<compile_context>
chip_gen: v5e
topology: v5e:2x2
jax: 0.10.0
libtpu: 0.0.40
codegen_flags: <defaults>
</compile_context>

<pallas_src>
import jax
import jax.numpy as jnp
from jax.experimental import pallas as pl
from jax.experimental.pallas import tpu as pltpu

BN_EPS = 1e-5
NEG_SLOPE = 0.2               # hw2/model.py uses nn.LeakyReLU(0.2)

DIMS = [784, 512, 256, 128, 10]   # layer sizes of Fully
OUT_PAD = 128                     # 10-wide head padded to a lane-dense width
TB_MAX = 512                      # batch-tile cap (~85% of HBM roofline)


def _leaky_relu(x):
    # slope in (0, 1) => LeakyReLU(x) == max(x, slope * x)
    return jnp.maximum(x, NEG_SLOPE * x)


def fully_kernel(
    x_ref,
    w1_ref, b1_ref,
    w2_ref, b2_ref,
    w3_ref, b3_ref,
    w4_ref, b4_ref,
    out_ref,
):
    # Block 1: Linear(784,512) [+ folded BN] + LeakyReLU (+ Dropout = id)
    x = x_ref[...].astype(jnp.bfloat16)          # cast in VMEM, not in the wrapper
    h = jnp.dot(x, w1_ref[...], preferred_element_type=jnp.float32)
    h = _leaky_relu(h + b1_ref[...])

    # Block 2: Linear(512,256) [+ folded BN] + LeakyReLU
    h = jnp.dot(h.astype(jnp.bfloat16), w2_ref[...],
                preferred_element_type=jnp.float32)
    h = _leaky_relu(h + b2_ref[...])

    # Block 3: Linear(256,128) [+ folded BN] + LeakyReLU
    h = jnp.dot(h.astype(jnp.bfloat16), w3_ref[...],
                preferred_element_type=jnp.float32)
    h = _leaky_relu(h + b3_ref[...])

    # Output head: Linear(128,128[pad10])
    h = jnp.dot(h.astype(jnp.bfloat16), w4_ref[...],
                preferred_element_type=jnp.float32)
    out_ref[...] = (h + b4_ref[...]).astype(out_ref.dtype)


def prepare_inference_args(params):
    """Fold BN + Linear bias into weights, pad the head, cast weights to bf16.

    Returns (w1, b1, w2, b2, w3, b3, w4, b4):
      weights bf16 (in, out), biases f32 (1, out).  w4/b4 are padded to 128
      output columns.  No K padding (kernel consumes the raw 784-deep K).
    """
    # NOTE: BN scale is folded into the weights before the bf16 cast; with the
    # PyTorch-default running stats (var=1) this adds no extra quantization
    # error.  If running variances were tiny, apply the f32 scale in-kernel.
    folded = []
    for i in (1, 2, 3):
        w = params[f"w{i}"]
        b = params[f"b{i}"]
        gamma = params[f"bn{i}_gamma"]
        beta = params[f"bn{i}_beta"]
        mean = params[f"bn{i}_mean"]
        var = params[f"bn{i}_var"]
        scale = gamma / jnp.sqrt(var + BN_EPS)
        shift = beta - mean * scale
        w_f = w * scale[None, :]                 # fold BN scale into weight cols
        b_f = b * scale + shift                  # fold bias + BN shift
        folded.append((w_f, b_f))

    (w1f, b1f), (w2f, b2f), (w3f, b3f) = folded

    # Pad output head: 10 -> 128 columns (zeros) for a lane-dense store.
    w4f = jnp.pad(params["w4"], ((0, 0), (0, OUT_PAD - DIMS[4])))
    b4f = jnp.pad(params["b4"], (0, OUT_PAD - DIMS[4]))

    bf16 = jnp.bfloat16
    return (
        w1f.astype(bf16), b1f.reshape(1, -1).astype(jnp.float32),
        w2f.astype(bf16), b2f.reshape(1, -1).astype(jnp.float32),
        w3f.astype(bf16), b3f.reshape(1, -1).astype(jnp.float32),
        w4f.astype(bf16), b4f.reshape(1, -1).astype(jnp.float32),
    )


def _choose_tb(B):
    """Pick the batch tile.

    * Tiny batches: one exact tile (block dims == full array dims, always legal).
    * Otherwise: sublane-aligned (multiple of 8), aim for >= 2 grid steps so
      the "parallel" axis can shard across both v7x TensorCores, cap at TB_MAX
      where the tiling sweep shows ~85% of HBM roofline.
    """
    if B <= 16:
        return B
    tb = -(-B // 2)                 # ceil(B / 2): at least two grid steps
    tb = ((tb + 7) // 8) * 8        # sublane alignment
    return min(TB_MAX, tb)


def fully_forward(x, params):
    """x: (B, 784) float32.  params: dict of weights (see init_params)."""
    B = x.shape[0]
    w1, b1, w2, b2, w3, b3, w4, b4 = prepare_inference_args(params)

    tb = _choose_tb(B)
    n_tiles = pl.cdiv(B, tb)        # ragged last tile if tb does not divide B

    weight_args = (w1, b1, w2, b2, w3, b3, w4, b4)
    weight_bytes = sum(int(a.size) * a.dtype.itemsize for a in weight_args)
    flops = 2 * B * (DIMS[0] * DIMS[1] + DIMS[1] * DIMS[2]
                     + DIMS[2] * DIMS[3] + DIMS[3] * OUT_PAD)
    bytes_accessed = B * DIMS[0] * 4 + B * OUT_PAD * 2 + weight_bytes

    const = lambda i: (0, 0)   # weights/biases: resident in VMEM across grid steps
    out_padded = pl.pallas_call(
        fully_kernel,
        out_shape=jax.ShapeDtypeStruct((B, OUT_PAD), jnp.bfloat16),
        grid=(n_tiles,),
        in_specs=[
            pl.BlockSpec((tb, DIMS[0]), lambda i: (i, 0)),      # x tile (f32, full K)
            pl.BlockSpec((DIMS[0], DIMS[1]), const),            # w1
            pl.BlockSpec((1, DIMS[1]), const),                  # b1
            pl.BlockSpec((DIMS[1], DIMS[2]), const),            # w2
            pl.BlockSpec((1, DIMS[2]), const),                  # b2
            pl.BlockSpec((DIMS[2], DIMS[3]), const),            # w3
            pl.BlockSpec((1, DIMS[3]), const),                  # b3
            pl.BlockSpec((DIMS[3], OUT_PAD), const),            # w4 (padded)
            pl.BlockSpec((1, OUT_PAD), const),                  # b4 (padded)
        ],
        out_specs=pl.BlockSpec((tb, OUT_PAD), lambda i: (i, 0)),
        compiler_params=pltpu.CompilerParams(
            dimension_semantics=("parallel",),
            vmem_limit_bytes=32 * 1024 * 1024,
        ),
        cost_estimate=pl.CostEstimate(
            flops=flops, transcendentals=0, bytes_accessed=bytes_accessed),
    )(x, *weight_args)

    return out_padded[:, : DIMS[4]].astype(jnp.float32)


def init_params(key):
    """Deterministic parameter init matching the shapes in Fully.__init__."""
    params = {}
    keys = jax.random.split(key, 8)
    k_it = iter(keys)
    for i in range(4):
        fan_in, fan_out = DIMS[i], DIMS[i + 1]
        bound = 1.0 / jnp.sqrt(fan_in)
        # stored as (in_features, out_features) so the kernel does x @ W
        params[f"w{i+1}"] = jax.random.uniform(
            next(k_it), (fan_in, fan_out), jnp.float32, -bound, bound
        )
        params[f"b{i+1}"] = jax.random.uniform(
            next(k_it), (fan_out,), jnp.float32, -bound, bound
        )
    # BatchNorm1d params / running stats (PyTorch defaults).
    for i, d in zip((1, 2, 3), DIMS[1:4]):
        params[f"bn{i}_gamma"] = jnp.ones((d,), jnp.float32)
        params[f"bn{i}_beta"] = jnp.zeros((d,), jnp.float32)
        params[f"bn{i}_mean"] = jnp.zeros((d,), jnp.float32)
        params[f"bn{i}_var"] = jnp.ones((d,), jnp.float32)
    return params


def fully_reference_f32(x, params):
    """Pure-JAX full-precision reference (original module semantics, eval mode)."""
    h = x
    for i in (1, 2, 3):
        h = h @ params[f"w{i}"] + params[f"b{i}"]
        scale = params[f"bn{i}_gamma"] / jnp.sqrt(params[f"bn{i}_var"] + BN_EPS)
        shift = params[f"bn{i}_beta"] - params[f"bn{i}_mean"] * scale
        h = h * scale + shift
        h = jnp.where(h > 0, h, NEG_SLOPE * h)
    return h @ params["w4"] + params["b4"]


def fully_reference_bf16(x, params):
    """Pure-JAX reference matching the kernel's bf16/f32-accum numerics."""
    w1, b1, w2, b2, w3, b3, w4, b4 = prepare_inference_args(params)
    h = jnp.dot(x.astype(jnp.bfloat16), w1, preferred_element_type=jnp.float32) + b1
    h = _leaky_relu(h)
    h = jnp.dot(h.astype(jnp.bfloat16), w2, preferred_element_type=jnp.float32) + b2
    h = _leaky_relu(h)
    h = jnp.dot(h.astype(jnp.bfloat16), w3, preferred_element_type=jnp.float32) + b3
    h = _leaky_relu(h)
    h = jnp.dot(h.astype(jnp.bfloat16), w4, preferred_element_type=jnp.float32) + b4
    # mirror the kernel's bf16 writeback + wrapper upcast
    return h.astype(jnp.bfloat16).astype(jnp.float32)[:, : DIMS[4]]


if __name__ == "__main__":
    key = jax.random.PRNGKey(0)
    k_param, k_x = jax.random.split(key)

    params = init_params(k_param)
    # forward() does x.view(B, -1); feed MNIST-like (B, 1, 28, 28) and flatten.
    B = 2
    x_img = jax.random.normal(k_x, (B, 1, 28, 28), jnp.float32)
    x = x_img.reshape(B, -1)  # (2, 784)

    out = fully_forward(x, params)
    out = jax.block_until_ready(out)
    assert out.shape == (B, 10)

    # Tight check vs a JAX reference using identical bf16/f32-accum numerics.
    ref_bf16 = fully_reference_bf16(x, params)
    assert jnp.allclose(out, ref_bf16, atol=1e-2, rtol=1e-2), "mismatch vs bf16 ref"

    # Loose check vs the full-precision original-semantics reference.
    ref_f32 = fully_reference_f32(x, params)
    assert jnp.allclose(out, ref_f32, atol=5e-2, rtol=5e-2), "mismatch vs f32 ref"

    print("KERNEL_OK")
</pallas_src>

<mosaic_0001>
module attributes {stable_mosaic.version = 11 : i64} {
  func.func @fully_kernel(%arg0: i32, %arg1: memref<2x784xf32, #tpu.memory_space<vmem>>, %arg2: memref<784x512xbf16, #tpu.memory_space<vmem>>, %arg3: memref<1x512xf32, #tpu.memory_space<vmem>>, %arg4: memref<512x256xbf16, #tpu.memory_space<vmem>>, %arg5: memref<1x256xf32, #tpu.memory_space<vmem>>, %arg6: memref<256x128xbf16, #tpu.memory_space<vmem>>, %arg7: memref<1x128xf32, #tpu.memory_space<vmem>>, %arg8: memref<128x128xbf16, #tpu.memory_space<vmem>>, %arg9: memref<1x128xf32, #tpu.memory_space<vmem>>, %arg10: memref<2x128xbf16, #tpu.memory_space<vmem>>) attributes {dimension_semantics = [#tpu.dimension_semantics<parallel>], iteration_bounds = array<i64: 1>, scalar_prefetch = 0 : i64, scratch_operands = 0 : i64, tpu.core_type = #tpu.core_type<tc>, window_params = [{transform_indices = @transform_0, window_bounds = array<i64: 2, 784>}, {pipeline_mode = #tpu.pipeline_mode<synchronous>, transform_indices = @transform_1, window_bounds = array<i64: 784, 512>}, {pipeline_mode = #tpu.pipeline_mode<synchronous>, transform_indices = @transform_2, window_bounds = array<i64: 1, 512>}, {pipeline_mode = #tpu.pipeline_mode<synchronous>, transform_indices = @transform_3, window_bounds = array<i64: 512, 256>}, {pipeline_mode = #tpu.pipeline_mode<synchronous>, transform_indices = @transform_4, window_bounds = array<i64: 1, 256>}, {pipeline_mode = #tpu.pipeline_mode<synchronous>, transform_indices = @transform_5, window_bounds = array<i64: 256, 128>}, {pipeline_mode = #tpu.pipeline_mode<synchronous>, transform_indices = @transform_6, window_bounds = array<i64: 1, 128>}, {pipeline_mode = #tpu.pipeline_mode<synchronous>, transform_indices = @transform_7, window_bounds = array<i64: 128, 128>}, {pipeline_mode = #tpu.pipeline_mode<synchronous>, transform_indices = @transform_8, window_bounds = array<i64: 1, 128>}, {transform_indices = @transform_9, window_bounds = array<i64: 2, 128>}]} {
    %c0 = arith.constant 0 : index
    %c0_0 = arith.constant 0 : index
    %0 = vector.load %arg1[%c0, %c0_0] : memref<2x784xf32, #tpu.memory_space<vmem>>, vector<2x784xf32>
    %1 = arith.truncf %0 : vector<2x784xf32> to vector<2x784xbf16>
    %c0_1 = arith.constant 0 : index
    %c0_2 = arith.constant 0 : index
    %2 = vector.load %arg2[%c0_1, %c0_2] : memref<784x512xbf16, #tpu.memory_space<vmem>>, vector<784x512xbf16>
    %cst = arith.constant dense<0.000000e+00> : vector<2x512xf32>
    %3 = tpu.matmul %1, %2, %cst {dimension_numbers = #tpu.dot_dimension_numbers<[1], [0], [0], [1], [0, 0, 1, 1], [], []>} : vector<2x784xbf16>, vector<784x512xbf16>, vector<2x512xf32> -> vector<2x512xf32>
    %c0_3 = arith.constant 0 : index
    %c0_4 = arith.constant 0 : index
    %4 = vector.load %arg3[%c0_3, %c0_4] : memref<1x512xf32, #tpu.memory_space<vmem>>, vector<1x512xf32>
    %5 = vector.broadcast %4 : vector<1x512xf32> to vector<2x512xf32>
    %6 = arith.addf %3, %5 : vector<2x512xf32>
    %cst_5 = arith.constant 2.000000e-01 : f32
    %7 = vector.broadcast %cst_5 : f32 to vector<2x512xf32>
    %8 = arith.mulf %7, %6 : vector<2x512xf32>
    %9 = arith.maximumf %6, %8 : vector<2x512xf32>
    %10 = arith.truncf %9 : vector<2x512xf32> to vector<2x512xbf16>
    %c0_6 = arith.constant 0 : index
    %c0_7 = arith.constant 0 : index
    %11 = vector.load %arg4[%c0_6, %c0_7] : memref<512x256xbf16, #tpu.memory_space<vmem>>, vector<512x256xbf16>
    %cst_8 = arith.constant dense<0.000000e+00> : vector<2x256xf32>
    %12 = tpu.matmul %10, %11, %cst_8 {dimension_numbers = #tpu.dot_dimension_numbers<[1], [0], [0], [1], [0, 0, 1, 1], [], []>} : vector<2x512xbf16>, vector<512x256xbf16>, vector<2x256xf32> -> vector<2x256xf32>
    %c0_9 = arith.constant 0 : index
    %c0_10 = arith.constant 0 : index
    %13 = vector.load %arg5[%c0_9, %c0_10] : memref<1x256xf32, #tpu.memory_space<vmem>>, vector<1x256xf32>
    %14 = vector.broadcast %13 : vector<1x256xf32> to vector<2x256xf32>
    %15 = arith.addf %12, %14 : vector<2x256xf32>
    %cst_11 = arith.constant 2.000000e-01 : f32
    %16 = vector.broadcast %cst_11 : f32 to vector<2x256xf32>
    %17 = arith.mulf %16, %15 : vector<2x256xf32>
    %18 = arith.maximumf %15, %17 : vector<2x256xf32>
    %19 = arith.truncf %18 : vector<2x256xf32> to vector<2x256xbf16>
    %c0_12 = arith.constant 0 : index
    %c0_13 = arith.constant 0 : index
    %20 = vector.load %arg6[%c0_12, %c0_13] : memref<256x128xbf16, #tpu.memory_space<vmem>>, vector<256x128xbf16>
    %cst_14 = arith.constant dense<0.000000e+00> : vector<2x128xf32>
    %21 = tpu.matmul %19, %20, %cst_14 {dimension_numbers = #tpu.dot_dimension_numbers<[1], [0], [0], [1], [0, 0, 1, 1], [], []>} : vector<2x256xbf16>, vector<256x128xbf16>, vector<2x128xf32> -> vector<2x128xf32>
    %c0_15 = arith.constant 0 : index
    %c0_16 = arith.constant 0 : index
    %22 = vector.load %arg7[%c0_15, %c0_16] : memref<1x128xf32, #tpu.memory_space<vmem>>, vector<1x128xf32>
    %23 = vector.broadcast %22 : vector<1x128xf32> to vector<2x128xf32>
    %24 = arith.addf %21, %23 : vector<2x128xf32>
    %cst_17 = arith.constant 2.000000e-01 : f32
    %25 = vector.broadcast %cst_17 : f32 to vector<2x128xf32>
    %26 = arith.mulf %25, %24 : vector<2x128xf32>
    %27 = arith.maximumf %24, %26 : vector<2x128xf32>
    %28 = arith.truncf %27 : vector<2x128xf32> to vector<2x128xbf16>
    %c0_18 = arith.constant 0 : index
    %c0_19 = arith.constant 0 : index
    %29 = vector.load %arg8[%c0_18, %c0_19] : memref<128x128xbf16, #tpu.memory_space<vmem>>, vector<128x128xbf16>
    %cst_20 = arith.constant dense<0.000000e+00> : vector<2x128xf32>
    %30 = tpu.matmul %28, %29, %cst_20 {dimension_numbers = #tpu.dot_dimension_numbers<[1], [0], [0], [1], [0, 0, 1, 1], [], []>} : vector<2x128xbf16>, vector<128x128xbf16>, vector<2x128xf32> -> vector<2x128xf32>
    %c0_21 = arith.constant 0 : index
    %c0_22 = arith.constant 0 : index
    %31 = vector.load %arg9[%c0_21, %c0_22] : memref<1x128xf32, #tpu.memory_space<vmem>>, vector<1x128xf32>
    %32 = vector.broadcast %31 : vector<1x128xf32> to vector<2x128xf32>
    %33 = arith.addf %30, %32 : vector<2x128xf32>
    %34 = arith.truncf %33 : vector<2x128xf32> to vector<2x128xbf16>
    %c0_23 = arith.constant 0 : index
    %c0_24 = arith.constant 0 : index
    %35 = vector.load %arg10[%c0_23, %c0_24] : memref<2x128xbf16, #tpu.memory_space<vmem>>, vector<2x128xbf16>
    tpu.vector_store %arg10[%c0_23, %c0_24], %34 {strides = array<i32>} : memref<2x128xbf16, #tpu.memory_space<vmem>>, vector<2x128xbf16>,
    return
  }
  func.func @transform_0(%arg0: i32) -> (i32, i32) {
    %c0_i32 = arith.constant 0 : i32
    %c0_i32_0 = arith.constant 0 : i32
    return %arg0, %c0_i32 : i32, i32
  }
  func.func @transform_1(%arg0: i32) -> (i32, i32) {
    %c0_i32 = arith.constant 0 : i32
    %c0_i32_0 = arith.constant 0 : i32
    %c0_i32_1 = arith.constant 0 : i32
    return %c0_i32, %c0_i32_0 : i32, i32
  }
  func.func @transform_2(%arg0: i32) -> (i32, i32) {
    %c0_i32 = arith.constant 0 : i32
    %c0_i32_0 = arith.constant 0 : i32
    %c0_i32_1 = arith.constant 0 : i32
    return %c0_i32, %c0_i32_0 : i32, i32
  }
  func.func @transform_3(%arg0: i32) -> (i32, i32) {
    %c0_i32 = arith.constant 0 : i32
    %c0_i32_0 = arith.constant 0 : i32
    %c0_i32_1 = arith.constant 0 : i32
    return %c0_i32, %c0_i32_0 : i32, i32
  }
  func.func @transform_4(%arg0: i32) -> (i32, i32) {
    %c0_i32 = arith.constant 0 : i32
    %c0_i32_0 = arith.constant 0 : i32
    %c0_i32_1 = arith.constant 0 : i32
    return %c0_i32, %c0_i32_0 : i32, i32
  }
  func.func @transform_5(%arg0: i32) -> (i32, i32) {
    %c0_i32 = arith.constant 0 : i32
    %c0_i32_0 = arith.constant 0 : i32
    %c0_i32_1 = arith.constant 0 : i32
    return %c0_i32, %c0_i32_0 : i32, i32
  }
  func.func @transform_6(%arg0: i32) -> (i32, i32) {
    %c0_i32 = arith.constant 0 : i32
    %c0_i32_0 = arith.constant 0 : i32
    %c0_i32_1 = arith.constant 0 : i32
    return %c0_i32, %c0_i32_0 : i32, i32
  }
  func.func @transform_7(%arg0: i32) -> (i32, i32) {
    %c0_i32 = arith.constant 0 : i32
    %c0_i32_0 = arith.constant 0 : i32
    %c0_i32_1 = arith.constant 0 : i32
    return %c0_i32, %c0_i32_0 : i32, i32
  }
  func.func @transform_8(%arg0: i32) -> (i32, i32) {
    %c0_i32 = arith.constant 0 : i32
    %c0_i32_0 = arith.constant 0 : i32
    %c0_i32_1 = arith.constant 0 : i32
    return %c0_i32, %c0_i32_0 : i32, i32
  }
  func.func @transform_9(%arg0: i32) -> (i32, i32) {
    %c0_i32 = arith.constant 0 : i32
    %c0_i32_0 = arith.constant 0 : i32
    return %arg0, %c0_i32 : i32, i32
  }
}

</mosaic_0001>

<bundles_post_ra>
// kernel: tpu_custom_call.1
= control target key start
LH: loop header
LB: loop body
LE: loop exit
PB: predicated region body
PF: predicated region fallthrough
CT: control target
= control target key end

     0   :  { %14 = vsyncpa [#allocation3], 0  ;;  %s4260_s0 = inlined_call_operand.hbm [shape: f32[2,784], index: 0, kind: input, shape index: {}]   ;;  %s4261_s1 = inlined_call_operand.hbm [shape: bf16[784,512], index: 1, kind: input, shape index: {}]   ;;  %s4262_s2 = inlined_call_operand.hbm [shape: f32[1,512], index: 2, kind: input, shape index: {}]   ;;  %s4263_s3 = inlined_call_operand.hbm [shape: bf16[512,256], index: 3, kind: input, shape index: {}]   ;;  %s4264_s4 = inlined_call_operand.vmem [shape: f32[1,256], index: 4, kind: input, shape index: {}]   ;;  %s4265_s5 = inlined_call_operand.hbm [shape: bf16[256,128], index: 5, kind: input, shape index: {}]   ;;  %s4266_s6 = inlined_call_operand.vmem [shape: f32[1,128], index: 6, kind: input, shape index: {}]   ;;  %s4267_s7 = inlined_call_operand.hbm [shape: bf16[128,128], index: 7, kind: input, shape index: {}]   ;;  %s4268_s8 = inlined_call_operand.vmem [shape: f32[1,128], index: 8, kind: input, shape index: {}]   ;;  %s4269_s9 = inlined_call_operand.hbm [shape: bf16[2,128], index: 9, kind: output, shape index: {}]  }
   0x1   :  { %15 = vsyncpa [#allocation6], 0 }
   0x2   :  { %16 = vsyncpa [#allocation9], 0 }
   0x3   :  { %17 = vsyncpa [#allocation12], 0  ;;  %s34_s11 = sshll.u32 %s4261_s1, 4  ;;  %s35_s11 = int_to_ptr.hbm [resolvable:$true] %s34_s11 }
   0x4   :  { %18 = vsyncpa [#allocation4], 0  ;;  %s4099_s12 = smov [#allocation5]   ;;  %s58_s16 = sshll.u32 %s4263_s3, 4  ;;  %s59_s16 = int_to_ptr.hbm [resolvable:$true] %s58_s16 }
   0x5   :  { %s36_s13 = sshll.u32 %s4099_s12, 4  ;;  %s4100_s17 = smov 256   ;;  %s37_s13 = int_to_ptr.vmem [resolvable:$true] %s36_s13 }
   0x6   :  { %s4101_s18 = smov 16   ;;  %s4102_s19 = smov [#allocation8]  }
   0x7   :  { %42 = dma.hbm_to_vmem [thread:$0]  %s35_s11, 25088, %s37_s13, [#allocation6], %s4100_s17, %s4100_s17, %s4101_s18  }
   0x8   :  { %s60_s20 = sshll.u32 %s4102_s19, 4  ;;  %s4103_s21 = smov 128   ;;  %s61_s20 = int_to_ptr.vmem [resolvable:$true] %s60_s20 }
   0x9   :  { %s4104_s22 = smov 8   ;;  %s24_s24 = sshll.u32 %s4260_s0, 4  ;;  %s25_s24 = int_to_ptr.hbm [resolvable:$true] %s24_s24 }
   0xa   :  { %66 = dma.hbm_to_vmem [thread:$0]  %s59_s16, 8192, %s61_s20, [#allocation9], %s4103_s21, %s4103_s21, %s4104_s22  }
   0xb   :  { %s4105_s25 = smov [#allocation2]   ;;  %s48_s28 = sshll.u32 %s4262_s2, 4  ;;  %s49_s28 = int_to_ptr.hbm [resolvable:$true] %s48_s28 }
   0xc   :  { %s26_s26 = sshll.u32 %s4105_s25, 4  ;;  %s4106_s29 = smov [#allocation7]   ;;  %s27_s26 = int_to_ptr.vmem [resolvable:$true] %s26_s26 }
   0xd   :  { %29 = dma.hbm_to_vmem [thread:$0]  %s25_s24, 224, %s27_s26, [#allocation3]  }
   0xe   :  { %s50_s30 = sshll.u32 %s4106_s29, 4  ;;  %s73_s12 = sshll.u32 %s4265_s5, 4  ;;  %s51_s30 = int_to_ptr.vmem [resolvable:$true] %s50_s30  ;;  %s74_s12 = int_to_ptr.hbm [resolvable:$true] %s73_s12 }
   0xf   :  { %53 = dma.hbm_to_vmem [thread:$0]  %s49_s28, 64, %s51_s30, [#allocation6]  }
  0x10   :  { %s4107_s0 = smov [#allocation10]   ;;  %s88_s16 = sshll.u32 %s4267_s7, 4  ;;  %s89_s16 = int_to_ptr.hbm [resolvable:$true] %s88_s16 }
  0x11   :  { %s75_s13 = sshll.u32 %s4107_s0, 4  ;;  %s4108_s17 = smov 64   ;;  %s76_s13 = int_to_ptr.vmem [resolvable:$true] %s75_s13 }
  0x12   :  { %s4109_s2 = smov 4   ;;  %s4110_s18 = smov [#allocation11]  }
  0x13   :  { %81 = dma.hbm_to_vmem [thread:$0]  %s74_s12, 2048, %s76_s13, [#allocation9], %s4108_s17, %s4108_s17, %s4109_s2  }
  0x14   :  { %s90_s19 = sshll.u32 %s4110_s18, 4  ;;  %s91_s19 = int_to_ptr.vmem [resolvable:$true] %s90_s19 }
  0x15   :  { %96 = dma.hbm_to_vmem [thread:$0]  %s89_s16, 1024, %s91_s19, [#allocation12], %s4108_s17, %s4108_s17, %s4109_s2  }
  0x16   :  { %4089 = dma.done.wait [#allocation3], 224  }
  0x17   :  { %4090 = vsyncadd [#allocation3], 4294967072 }
  0x18   :  { %4091 = dma.done.wait [#allocation6], 25152  }
  0x19   :  { %4092 = vsyncadd [#allocation6], 4294942144 }
  0x1a   :  { %4093 = dma.done.wait [#allocation9], 10240  }
  0x1b   :  { %4094 = vsyncadd [#allocation9], 4294957056 }
  0x1c   :  { %4095 = dma.done.wait [#allocation12], 1024  }
  0x1d   :  { %4096 = vsyncadd [#allocation12], 4294966272  ;;  %v2596_v0 = vld [vmem:[#allocation5 + $0xe0] sm:$0xf]  ;;  %v3652_v1 = vld [vmem:[#allocation5 + $0xec] sm:$0xf0] }
  0x1e   :  { %v2724_v2 = vld [vmem:[#allocation5 + $0x1e0] sm:$0xf]  ;;  %v2597_v3 = vor.u32 %v3652_v1, %v2596_v0  ;;  %v3684_v4 = vld [vmem:[#allocation5 + $0x1ec] sm:$0xf0]  ;;  %vm1338_vm0 = vcmask 130048   ;;  %s4111_s1 = smov [#allocation13]  }
  0x1f   :  { %v2852_v5 = vld [vmem:[#allocation5 + $0x2e0] sm:$0xf]  ;;  %v3716_v6 = vld [vmem:[#allocation5 + $0x2ec] sm:$0xf0]  ;;  %v2725_v7 = vor.u32 %v3684_v4, %v2724_v2  ;;  %s2467_s23 = sshll.u32 %s4111_s1, 4  ;;  %s2468_s23 = int_to_ptr.vmem [resolvable:$true] %s2467_s23 }
  0x20   :  { %v2853_v8 = vor.u32 %v3716_v6, %v2852_v5  ;;  %v2980_v9 = vld [vmem:[#allocation5 + $0x3e0] sm:$0xf]  ;;  %v3748_v10 = vld [vmem:[#allocation5 + $0x3ec] sm:$0xf0]  ;;  %1342 = vmatpush.bf16.msra.mxu0 %v2597_v3 }
  0x21   :  { %v2580_v11 = vld [vmem:[#allocation5 + $0xc0] sm:$0xf]  ;;  %v2981_v12 = vor.u32 %v3748_v10, %v2980_v9  ;;  %v3648_v13 = vld [vmem:[#allocation5 + $0xcc] sm:$0xf0]  ;;  %1355 = vmatpush.bf16.msra.mxu1 %v2725_v7 }
  0x22   :  { %v2708_v14 = vld [vmem:[#allocation5 + $0x1c0] sm:$0xf]  ;;  %v3680_v15 = vld [vmem:[#allocation5 + $0x1cc] sm:$0xf0]  ;;  %1368 = vmatpush.bf16.msra.mxu2 %v2853_v8  ;;  %v2581_v16 = vor.u32 %v3648_v13, %v2580_v11 }
  0x23   :  { %v2709_v17 = vor.u32 %v3680_v15, %v2708_v14  ;;  %v2836_v18 = vld [vmem:[#allocation5 + $0x2c0] sm:$0xf]  ;;  %v3712_v19 = vld [vmem:[#allocation5 + $0x2cc] sm:$0xf0]  ;;  %1381 = vmatpush.bf16.msra.mxu3 %v2981_v12 }
  0x24   :  { %v2964_v20 = vld [vmem:[#allocation5 + $0x3c0] sm:$0xf]  ;;  %v2837_v21 = vor.u32 %v3712_v19, %v2836_v18  ;;  %v3744_v22 = vld [vmem:[#allocation5 + $0x3cc] sm:$0xf0]  ;;  %1343 = vmatpush.bf16.msra.mxu0 %v2581_v16 }
  0x25   :  { %v2564_v23 = vld [vmem:[#allocation5 + $0xa0] sm:$0xf]  ;;  %v3644_v24 = vld [vmem:[#allocation5 + $0xac] sm:$0xf0]  ;;  %v2965_v25 = vor.u32 %v3744_v22, %v2964_v20  ;;  %1356 = vmatpush.bf16.msra.mxu1 %v2709_v17 }
  0x26   :  { %v2692_v26 = vld [vmem:[#allocation5 + $0x1a0] sm:$0xf]  ;;  %v3676_v27 = vld [vmem:[#allocation5 + $0x1ac] sm:$0xf0]  ;;  %v2565_v29 = vor.u32 %v3644_v24, %v2564_v23  ;;  %1369 = vmatpush.bf16.msra.mxu2 %v2837_v21 }
  0x27   :  { %v2820_v28 = vld [vmem:[#allocation5 + $0x2a0] sm:$0xf]  ;;  %v3708_v30 = vld [vmem:[#allocation5 + $0x2ac] sm:$0xf0]  ;;  %v2693_v33 = vor.u32 %v3676_v27, %v2692_v26  ;;  %1382 = vmatpush.bf16.msra.mxu3 %v2965_v25 }
  0x28   :  { %v2948_v31 = vld [vmem:[#allocation5 + $0x3a0] sm:$0xf]  ;;  %v3740_v32 = vld [vmem:[#allocation5 + $0x3ac] sm:$0xf0]  ;;  %v2821_v34 = vor.u32 %v3708_v30, %v2820_v28  ;;  %1344 = vmatpush.bf16.msra.mxu0 %v2565_v29 }
  0x29   :  { %v2548_v35 = vld [vmem:[#allocation5 + $0x80] sm:$0xf]  ;;  %v3640_v36 = vld [vmem:[#allocation5 + $0x8c] sm:$0xf0]  ;;  %v2949_v38 = vor.u32 %v3740_v32, %v2948_v31  ;;  %1357 = vmatpush.bf16.msra.mxu1 %v2693_v33 }
  0x2a   :  { %v2676_v37 = vld [vmem:[#allocation5 + $0x180] sm:$0xf]  ;;  %v3672_v39 = vld [vmem:[#allocation5 + $0x18c] sm:$0xf0]  ;;  %v2549_v44 = vor.u32 %v3640_v36, %v2548_v35  ;;  %1370 = vmatpush.bf16.msra.mxu2 %v2821_v34  ;;  %v3650_v34 = vld [vmem:[#allocation5 + $0xe4] sm:$0xf] }
  0x2b   :  { %v2804_v40 = vld [vmem:[#allocation5 + $0x280] sm:$0xf]  ;;  %v3704_v41 = vld [vmem:[#allocation5 + $0x28c] sm:$0xf0]  ;;  %v2677_v45 = vor.u32 %v3672_v39, %v2676_v37  ;;  %1383 = vmatpush.bf16.msra.mxu3 %v2949_v38  ;;  %v2598_v35 = vld [vmem:[#allocation5 + $0xf0] sm:$0xf0] }
  0x2c   :  { %v2932_v42 = vld [vmem:[#allocation5 + $0x380] sm:$0xf]  ;;  %v3736_v43 = vld [vmem:[#allocation5 + $0x38c] sm:$0xf0]  ;;  %v2805_v46 = vor.u32 %v3704_v41, %v2804_v40  ;;  %1345 = vmatpush.bf16.msra.mxu0 %v2549_v44  ;;  %v3682_v40 = vld [vmem:[#allocation5 + $0x1e4] sm:$0xf] }
  0x2d   :  { %v2532_v47 = vld [vmem:[#allocation5 + $0x60] sm:$0xf]  ;;  %v3636_v48 = vld [vmem:[#allocation5 + $0x6c] sm:$0xf0]  ;;  %v2933_v50 = vor.u32 %v3736_v43, %v2932_v42  ;;  %1358 = vmatpush.bf16.msra.mxu1 %v2677_v45  ;;  %v2726_v41 = vld [vmem:[#allocation5 + $0x1f0] sm:$0xf0] }
  0x2e   :  { %v2660_v49 = vld [vmem:[#allocation5 + $0x160] sm:$0xf]  ;;  %v3668_v51 = vld [vmem:[#allocation5 + $0x16c] sm:$0xf0]  ;;  %v2533_v56 = vor.u32 %v3636_v48, %v2532_v47  ;;  %1371 = vmatpush.bf16.msra.mxu2 %v2805_v46  ;;  %v2601_v48 = vor.u32 %v3650_v34, %v2598_v35 }
  0x2f   :  { %v2788_v52 = vld [vmem:[#allocation5 + $0x260] sm:$0xf]  ;;  %v3700_v53 = vld [vmem:[#allocation5 + $0x26c] sm:$0xf0]  ;;  %v2661_v57 = vor.u32 %v3668_v51, %v2660_v49  ;;  %1384 = vmatpush.bf16.msra.mxu3 %v2933_v50  ;;  %v3646_v50 = vld [vmem:[#allocation5 + $0xc4] sm:$0xf] }
  0x30   :  { %v2916_v54 = vld [vmem:[#allocation5 + $0x360] sm:$0xf]  ;;  %v3732_v55 = vld [vmem:[#allocation5 + $0x36c] sm:$0xf0]  ;;  %v2789_v58 = vor.u32 %v3700_v53, %v2788_v52  ;;  %1346 = vmatpush.bf16.msra.mxu0 %v2533_v56  ;;  %v2582_v51 = vld [vmem:[#allocation5 + $0xd0] sm:$0xf0] }
  0x31   :  { %v2516_v59 = vld [vmem:[#allocation5 + $0x40] sm:$0xf]  ;;  %v3632_v60 = vld [vmem:[#allocation5 + $0x4c] sm:$0xf0]  ;;  %v2917_v62 = vor.u32 %v3732_v55, %v2916_v54  ;;  %1359 = vmatpush.bf16.msra.mxu1 %v2661_v57 }
  0x32   :  { %v2644_v61 = vld [vmem:[#allocation5 + $0x140] sm:$0xf]  ;;  %v3664_v63 = vld [vmem:[#allocation5 + $0x14c] sm:$0xf0]  ;;  %v2517_v4 = vor.u32 %v3632_v60, %v2516_v59  ;;  %1372 = vmatpush.bf16.msra.mxu2 %v2789_v58  ;;  %v2729_v59 = vor.u32 %v3682_v40, %v2726_v41 }
  0x33   :  { %v2772_v0 = vld [vmem:[#allocation5 + $0x240] sm:$0xf]  ;;  %v3696_v1 = vld [vmem:[#allocation5 + $0x24c] sm:$0xf0]  ;;  %v2645_v6 = vor.u32 %v3664_v63, %v2644_v61  ;;  %1385 = vmatpush.bf16.msra.mxu3 %v2917_v62  ;;  %v3678_v61 = vld [vmem:[#allocation5 + $0x1c4] sm:$0xf] }
  0x34   :  { %v2900_v2 = vld [vmem:[#allocation5 + $0x340] sm:$0xf]  ;;  %v3728_v3 = vld [vmem:[#allocation5 + $0x34c] sm:$0xf0]  ;;  %v2773_v7 = vor.u32 %v3696_v1, %v2772_v0  ;;  %1347 = vmatpush.bf16.msra.mxu0 %v2517_v4  ;;  %v2710_v62 = vld [vmem:[#allocation5 + $0x1d0] sm:$0xf0]  ;;  %v2585_v1 = vor.u32 %v3646_v50, %v2582_v51 }
  0x35   :  { %v2500_v5 = vld [vmem:[#allocation5 + $0x20] sm:$0xf]  ;;  %v3628_v8 = vld [vmem:[#allocation5 + $0x2c] sm:$0xf0]  ;;  %v2901_v11 = vor.u32 %v3728_v3, %v2900_v2  ;;  %1360 = vmatpush.bf16.msra.mxu1 %v2645_v6  ;;  %v3642_v6 = vld [vmem:[#allocation5 + $0xa4] sm:$0xf] }
  0x36   :  { %v2628_v9 = vld [vmem:[#allocation5 + $0x120] sm:$0xf]  ;;  %v3660_v10 = vld [vmem:[#allocation5 + $0x12c] sm:$0xf0]  ;;  %v2501_v18 = vor.u32 %v3628_v8, %v2500_v5  ;;  %1373 = vmatpush.bf16.msra.mxu2 %v2773_v7  ;;  %v2566_v7 = vld [vmem:[#allocation5 + $0xb0] sm:$0xf0] }
  0x37   :  { %v2756_v12 = vld [vmem:[#allocation5 + $0x220] sm:$0xf]  ;;  %v3692_v13 = vld [vmem:[#allocation5 + $0x22c] sm:$0xf0]  ;;  %v2629_v22 = vor.u32 %v3660_v10, %v2628_v9  ;;  %1386 = vmatpush.bf16.msra.mxu3 %v2901_v11  ;;  %v2713_v9 = vor.u32 %v3678_v61, %v2710_v62  ;;  %v3674_v11 = vld [vmem:[#allocation5 + $0x1a4] sm:$0xf] }
  0x38   :  { %v2884_v14 = vld [vmem:[#allocation5 + $0x320] sm:$0xf]  ;;  %v3724_v15 = vld [vmem:[#allocation5 + $0x32c] sm:$0xf0]  ;;  %v2757_v23 = vor.u32 %v3692_v13, %v2756_v12  ;;  %1348 = vmatpush.bf16.msra.mxu0 %v2501_v18  ;;  %v2694_v12 = vld [vmem:[#allocation5 + $0x1b0] sm:$0xf0] }
  0x39   :  { %v2484_v16 = vld [vmem:[#allocation5] sm:$0xf]  ;;  %v3624_v17 = vld [vmem:[#allocation5 + $0xc] sm:$0xf0]  ;;  %v2885_v26 = vor.u32 %v3724_v15, %v2884_v14  ;;  %1361 = vmatpush.bf16.msra.mxu1 %v2629_v22  ;;  %v2569_v14 = vor.u32 %v3642_v6, %v2566_v7  ;;  %v2697_v22 = vor.u32 %v3674_v11, %v2694_v12  ;;  %v3658_v62 = vld [vmem:[#allocation5 + $0x124] sm:$0xf] }
  0x3a   :  { %v2612_v19 = vld [vmem:[#allocation5 + $0x100] sm:$0xf]  ;;  %v3656_v20 = vld [vmem:[#allocation5 + $0x10c] sm:$0xf0]  ;;  %v2485_v33 = vor.u32 %v3624_v17, %v2484_v16  ;;  %1374 = vmatpush.bf16.msra.mxu2 %v2757_v23  ;;  %v2486_v11 = vld [vmem:[#allocation5 + $0x10] sm:$0xf0] }
  0x3b   :  { %v124_v21 = vld [vmem:[#allocation2] sm:$0xff]  ;;  %v2740_v24 = vld [vmem:[#allocation5 + $0x200] sm:$0xf]  ;;  %v2613_v37 = vor.u32 %v3656_v20, %v2612_v19  ;;  %1387 = vmatpush.bf16.msra.mxu3 %v2885_v26  ;;  %v3638_v19 = vld [vmem:[#allocation5 + $0x84] sm:$0xf] }
  0x3c   :  { %v3688_v25 = vld [vmem:[#allocation5 + $0x20c] sm:$0xf0]  ;;  %128 = vst [vmem:[#allocation1] ss:$4 sm:$0xff] %v124_v21  ;;  %v2868_v27 = vld [vmem:[#allocation5 + $0x300] sm:$0xf]  ;;  %1349 = vmatpush.bf16.msra.mxu0 %v2485_v33 }
  0x3d   :  { %v3720_v28 = vld [vmem:[#allocation5 + $0x30c] sm:$0xf0]  ;;  %v3108_v29 = vld [vmem:[#allocation5 + $0x4e0] sm:$0xf]  ;;  %v2741_v38 = vor.u32 %v3688_v25, %v2740_v24  ;;  %1362 = vmatpush.bf16.msra.mxu1 %v2613_v37  ;;  %v2550_v20 = vld [vmem:[#allocation5 + $0x90] sm:$0xf0] }
  0x3e   :  { %v3780_v30 = vld [vmem:[#allocation5 + $0x4ec] sm:$0xf0]  ;;  %v3236_v31 = vld [vmem:[#allocation5 + $0x5e0] sm:$0xf]  ;;  %v2869_v42 = vor.u32 %v3720_v28, %v2868_v27  ;;  %v3670_v21 = vld [vmem:[#allocation5 + $0x184] sm:$0xf]  ;;  %v2553_v28 = vor.u32 %v3638_v19, %v2550_v20 }
  0x3f   :  { %v3812_v32 = vld [vmem:[#allocation5 + $0x5ec] sm:$0xf0]  ;;  %v3252_v36 = vld [vmem:[#allocation5 + $0x600] sm:$0xf]  ;;  %v3109_v43 = vor.u32 %v3780_v30, %v3108_v29  ;;  %1375 = vmatpush.bf16.msra.mxu2 %v2741_v38  ;;  %v2678_v24 = vld [vmem:[#allocation5 + $0x190] sm:$0xf0] }
  0x40   :  { %v3816_v39 = vld [vmem:[#allocation5 + $0x60c] sm:$0xf0]  ;;  %v3092_v44 = vld [vmem:[#allocation5 + $0x4c0] sm:$0xf]  ;;  %v3237_v47 = vor.u32 %v3812_v32, %v3236_v31  ;;  %1388 = vmatpush.bf16.msra.mxu3 %v2869_v42  ;;  %v125_v31 = vld [vmem:[#allocation2 + $0x8] sm:$0x3f]  ;;  %v2681_v34 = vor.u32 %v3670_v21, %v2678_v24 }
  0x41   :  { %v3776_v45 = vld [vmem:[#allocation5 + $0x4cc] sm:$0xf0]  ;;  %v3220_v46 = vld [vmem:[#allocation5 + $0x5c0] sm:$0xf]  ;;  %v3253_v55 = vor.u32 %v3816_v39, %v3252_v36  ;;  %1394 = vmatpush.bf16.msrb.mxu0 %v3109_v43  ;;  %v3634_v32 = vld [vmem:[#allocation5 + $0x64] sm:$0xf] }
  0x42   :  { %v3808_v49 = vld [vmem:[#allocation5 + $0x5cc] sm:$0xf0]  ;;  %v3093_v60 = vor.u32 %v3776_v45, %v3092_v44  ;;  %1407 = vmatpush.bf16.msrb.mxu1 %v3237_v47  ;;  %v3076_v2 = vld [vmem:[#allocation5 + $0x4a0] sm:$0xf]  ;;  %v2534_v33 = vld [vmem:[#allocation5 + $0x70] sm:$0xf0] }
  0x43   :  { %v133_v52 = vld.sshfl [vmem:[#allocation1 + $0x10] sm:$0xff pattern:$0x73625140]  ;;  %v131_v53 = vld.sshfl [vmem:[#allocation1] sm:$0xff pattern:$0x73625140]  ;;  %v3221_v0 = vor.u32 %v3808_v49, %v3220_v46  ;;  %1427 = vmatpush.bf16.msrb.mxu2 %v3253_v55  ;;  %v2537_v39 = vor.u32 %v3634_v32, %v2534_v33 }
  0x44   :  { %v4180_v54 = vpack.c.bf16 %v133_v52, %v133_v52  ;;  %v4182_v56 = vpack.c.bf16 %v131_v53, %v131_v53  ;;  %v134_v57 = vld.sshfl [vmem:[#allocation1 + $0x18] sm:$0xff pattern:$0x73625140]  ;;  %v132_v58 = vld.sshfl [vmem:[#allocation1 + $0x8] sm:$0xff pattern:$0x73625140]  ;;  %1433 = vmatpush.bf16.msrb.mxu3 %v2601_v48 }
  0x45   :  { %v4184_v63 = vpack.c.bf16 %v134_v57, %v134_v57  ;;  %v3772_v3 = vld [vmem:[#allocation5 + $0x4ac] sm:$0xf0]  ;;  %v3204_v4 = vld [vmem:[#allocation5 + $0x5a0] sm:$0xf]  ;;  %v4188_v8 = vpack.c.bf16 %v132_v58, %v132_v58  ;;  %1395 = vmatpush.bf16.msrb.mxu0 %v3093_v60  ;;  %130 = vst [vmem:[#allocation1 + $0x20] ss:$4 sm:$0xff] %v125_v31 }
  0x46   :  { %1376 = vmatmul.bf16.vlgmr.msra.gmra.mxu2 %v4180_v54  ;;  %1350 = vmatmul.bf16.vlgmr.msra.gmra.mxu0 %v4182_v56  ;;  %v3804_v5 = vld [vmem:[#allocation5 + $0x5ac] sm:$0xf0]  ;;  %v3077_v10 = vor.u32 %v3772_v3, %v3076_v2  ;;  %v3060_v15 = vld [vmem:[#allocation5 + $0x480] sm:$0xf]  ;;  %v3666_v36 = vld [vmem:[#allocation5 + $0x164] sm:$0xf] }
  0x47   :  { %1389 = vmatmul.bf16.vlgmr.msra.gmra.mxu3 %v4184_v63  ;;  %1446 = vmatpush.bf16.msra.mxu2 %v2729_v59  ;;  %v3205_v13 = vor.u32 %v3804_v5, %v3204_v4  ;;  %v3768_v16 = vld [vmem:[#allocation5 + $0x48c] sm:$0xf0]  ;;  %v3188_v17 = vld [vmem:[#allocation5 + $0x580] sm:$0xf]  ;;  %v2662_v37 = vld [vmem:[#allocation5 + $0x170] sm:$0xf0] }
  0x48   :  { %1408 = vmatpush.bf16.msrb.mxu1 %v3221_v0  ;;  %1434 = vmatpush.bf16.msrb.mxu3 %v2585_v1  ;;  %v3800_v18 = vld [vmem:[#allocation5 + $0x58c] sm:$0xf0]  ;;  %v3061_v23 = vor.u32 %v3768_v16, %v3060_v15  ;;  %v3044_v25 = vld [vmem:[#allocation5 + $0x460] sm:$0xf]  ;;  %v3630_v44 = vld [vmem:[#allocation5 + $0x44] sm:$0xf]  ;;  %v2665_v47 = vor.u32 %v3666_v36, %v2662_v37 }
  0x49   :  { %1363 = vmatmul.bf16.vlgmr.msra.gmra.mxu1 %v4188_v8  ;;  %1396 = vmatpush.bf16.msrb.mxu0 %v3077_v10  ;;  %v3764_v26 = vld [vmem:[#allocation5 + $0x46c] sm:$0xf0]  ;;  %v3189_v27 = vor.u32 %v3800_v18, %v3188_v17  ;;  %v3172_v29 = vld [vmem:[#allocation5 + $0x560] sm:$0xf]  ;;  %v2518_v45 = vld [vmem:[#allocation5 + $0x50] sm:$0xf0] }
  0x4a   :  { %v3796_v30 = vld [vmem:[#allocation5 + $0x56c] sm:$0xf0]  ;;  %v3045_v35 = vor.u32 %v3764_v26, %v3044_v25  ;;  %v3028_v40 = vld [vmem:[#allocation5 + $0x440] sm:$0xf]  ;;  %v3662_v46 = vld [vmem:[#allocation5 + $0x144] sm:$0xf]  ;;  %v2521_v53 = vor.u32 %v3630_v44, %v2518_v45 }
  0x4b   :  { %1447 = vmatpush.bf16.msra.mxu2 %v2713_v9  ;;  %v3173_v38 = vor.u32 %v3796_v30, %v3172_v29  ;;  %v3760_v41 = vld [vmem:[#allocation5 + $0x44c] sm:$0xf0]  ;;  %v3156_v42 = vld [vmem:[#allocation5 + $0x540] sm:$0xf]  ;;  %v2646_v49 = vld [vmem:[#allocation5 + $0x150] sm:$0xf0] }
  0x4c   :  { %1409 = vmatpush.bf16.msrb.mxu1 %v3205_v13  ;;  %1435 = vmatpush.bf16.msrb.mxu3 %v2569_v14  ;;  %v3792_v43 = vld [vmem:[#allocation5 + $0x54c] sm:$0xf0]  ;;  %v3029_v48 = vor.u32 %v3760_v41, %v3028_v40  ;;  %v3012_v50 = vld [vmem:[#allocation5 + $0x420] sm:$0xf]  ;;  %v3626_v59 = vld [vmem:[#allocation5 + $0x24] sm:$0xf]  ;;  %v2649_v1 = vor.u32 %v3662_v46, %v2646_v49 }
  0x4d   :  { %1397 = vmatpush.bf16.msrb.mxu0 %v3061_v23  ;;  %v3756_v51 = vld [vmem:[#allocation5 + $0x42c] sm:$0xf0]  ;;  %v3157_v52 = vor.u32 %v3792_v43, %v3156_v42  ;;  %v3140_v55 = vld [vmem:[#allocation5 + $0x520] sm:$0xf]  ;;  %v2502_v60 = vld [vmem:[#allocation5 + $0x30] sm:$0xf0] }
  0x4e   :  { %v137_v57 = vld.sshfl [vmem:[#allocation1 + $0x30] sm:$0xff pattern:$0x73625140]  ;;  %v3788_v58 = vld [vmem:[#allocation5 + $0x52c] sm:$0xf0]  ;;  %v3013_v2 = vor.u32 %v3756_v51, %v3012_v50  ;;  %v2505_v7 = vor.u32 %v3626_v59, %v2502_v60 }
  0x4f   :  { %1448 = vmatpush.bf16.msra.mxu2 %v2697_v22  ;;  %v4192_v61 = vpack.c.bf16 %v137_v57, %v137_v57  ;;  %v2630_v0 = vld [vmem:[#allocation5 + $0x130] sm:$0xf0]  ;;  %v2996_v3 = vld [vmem:[#allocation5 + $0x400] sm:$0xf]  ;;  %v3752_v4 = vld [vmem:[#allocation5 + $0x40c] sm:$0xf0]  ;;  %v3141_v6 = vor.u32 %v3788_v58, %v3140_v55 }
  0x50   :  { %1410 = vmatpush.bf16.msrb.mxu1 %v3189_v27  ;;  %1436 = vmatpush.bf16.msrb.mxu3 %v2553_v28  ;;  %v3124_v5 = vld [vmem:[#allocation5 + $0x500] sm:$0xf]  ;;  %v3784_v9 = vld [vmem:[#allocation5 + $0x50c] sm:$0xf0]  ;;  %v3622_v10 = vld [vmem:[#allocation5 + $0x4] sm:$0xf]  ;;  %v2633_v18 = vor.u32 %v3658_v62, %v2630_v0  ;;  %v2997_v19 = vor.u32 %v3752_v4, %v2996_v3 }
  0x51   :  { %1398 = vmatpush.bf16.msrb.mxu0 %v3045_v35  ;;  %v3714_v12 = vld [vmem:[#allocation5 + $0x2e4] sm:$0xf]  ;;  %v2854_v13 = vld [vmem:[#allocation5 + $0x2f0] sm:$0xf0]  ;;  %v3125_v22 = vor.u32 %v3784_v9, %v3124_v5  ;;  %v2489_v23 = vor.u32 %v3622_v10, %v2486_v11 }
  0x52   :  { %v3746_v14 = vld [vmem:[#allocation5 + $0x3e4] sm:$0xf]  ;;  %v2982_v15 = vld [vmem:[#allocation5 + $0x3f0] sm:$0xf0]  ;;  %v2857_v26 = vor.u32 %v3714_v12, %v2854_v13 }
  0x53   :  { %1449 = vmatpush.bf16.msra.mxu2 %v2681_v34  ;;  %v3778_v16 = vld [vmem:[#allocation5 + $0x4e4] sm:$0xf]  ;;  %v3110_v17 = vld [vmem:[#allocation5 + $0x4f0] sm:$0xf0]  ;;  %v2985_v27 = vor.u32 %v3746_v14, %v2982_v15 }
  0x54   :  { %1411 = vmatpush.bf16.msrb.mxu1 %v3173_v38  ;;  %1437 = vmatpush.bf16.msrb.mxu3 %v2537_v39  ;;  %v135_v20 = vld.sshfl [vmem:[#allocation1 + $0x20] sm:$0xff pattern:$0x73625140]  ;;  %v3654_v21 = vld [vmem:[#allocation5 + $0x104] sm:$0xf]  ;;  %v3113_v31 = vor.u32 %v3778_v16, %v3110_v17 }
  0x55   :  { %1399 = vmatpush.bf16.msrb.mxu0 %v3029_v48  ;;  %v2614_v24 = vld [vmem:[#allocation5 + $0x110] sm:$0xf0]  ;;  %v3810_v28 = vld [vmem:[#allocation5 + $0x5e4] sm:$0xf]  ;;  %v4196_v32 = vpack.c.bf16 %v135_v20, %v135_v20 }
  0x56   :  { %3266 = vmatmul.msk.bf16.vlgmr.msrb.gmra.mxu2 %vm1338_vm0, %v4192_v61  ;;  %v136_v25 = vld.sshfl [vmem:[#allocation1 + $0x28] sm:$0xff pattern:$0x73625140]  ;;  %v3710_v30 = vld [vmem:[#allocation5 + $0x2c4] sm:$0xf]  ;;  %v2617_v36 = vor.u32 %v3654_v21, %v2614_v24 }
  0x57   :  { %1450 = vmatpush.bf16.msra.mxu2 %v2665_v47  ;;  %v3238_v29 = vld [vmem:[#allocation5 + $0x5f0] sm:$0xf0]  ;;  %v3742_v34 = vld [vmem:[#allocation5 + $0x3c4] sm:$0xf]  ;;  %v4198_v37 = vpack.c.bf16 %v136_v25, %v136_v25 }
  0x58   :  { %1412 = vmatpush.bf16.msrb.mxu1 %v3157_v52  ;;  %1438 = vmatpush.bf16.msrb.mxu3 %v2521_v53  ;;  %v2838_v33 = vld [vmem:[#allocation5 + $0x2d0] sm:$0xf0]  ;;  %v3774_v38 = vld [vmem:[#allocation5 + $0x4c4] sm:$0xf]  ;;  %v3241_v40 = vor.u32 %v3810_v28, %v3238_v29 }
  0x59   :  { %1400 = vmatpush.bf16.msrb.mxu0 %v3013_v2  ;;  %v2966_v35 = vld [vmem:[#allocation5 + $0x3d0] sm:$0xf0]  ;;  %v2841_v41 = vor.u32 %v3710_v30, %v2838_v33  ;;  %v3806_v43 = vld [vmem:[#allocation5 + $0x5c4] sm:$0xf] }
  0x5a   :  { %v3094_v39 = vld [vmem:[#allocation5 + $0x4d0] sm:$0xf0]  ;;  %v2969_v42 = vor.u32 %v3742_v34, %v2966_v35  ;;  %v3706_v45 = vld [vmem:[#allocation5 + $0x2a4] sm:$0xf] }
  0x5b   :  { %1451 = vmatpush.bf16.msra.mxu2 %v2649_v1  ;;  %v3222_v44 = vld [vmem:[#allocation5 + $0x5d0] sm:$0xf0]  ;;  %v3097_v46 = vor.u32 %v3774_v38, %v3094_v39  ;;  %v3738_v48 = vld [vmem:[#allocation5 + $0x3a4] sm:$0xf] }
  0x5c   :  { %1413 = vmatpush.bf16.msrb.mxu1 %v3141_v6  ;;  %1439 = vmatpush.bf16.msrb.mxu3 %v2505_v7  ;;  %v2822_v47 = vld [vmem:[#allocation5 + $0x2b0] sm:$0xf0]  ;;  %v3770_v50 = vld [vmem:[#allocation5 + $0x4a4] sm:$0xf]  ;;  %v3225_v52 = vor.u32 %v3806_v43, %v3222_v44 }
  0x5d   :  { %1401 = vmatpush.bf16.msrb.mxu0 %v2997_v19  ;;  %v2950_v49 = vld [vmem:[#allocation5 + $0x3b0] sm:$0xf0]  ;;  %v2825_v53 = vor.u32 %v3706_v45, %v2822_v47  ;;  %v3802_v57 = vld [vmem:[#allocation5 + $0x5a4] sm:$0xf] }
  0x5e   :  { %v3078_v51 = vld [vmem:[#allocation5 + $0x4b0] sm:$0xf0]  ;;  %v2953_v55 = vor.u32 %v3738_v48, %v2950_v49  ;;  %v3702_v59 = vld [vmem:[#allocation5 + $0x284] sm:$0xf] }
  0x5f   :  { %1452 = vmatpush.bf16.msra.mxu2 %v2633_v18  ;;  %v3206_v58 = vld [vmem:[#allocation5 + $0x5b0] sm:$0xf0]  ;;  %v3081_v60 = vor.u32 %v3770_v50, %v3078_v51  ;;  %v3734_v0 = vld [vmem:[#allocation5 + $0x384] sm:$0xf] }
  0x60   :  { %1414 = vmatpush.bf16.msrb.mxu1 %v3125_v22  ;;  %1440 = vmatpush.bf16.msrb.mxu3 %v2489_v23  ;;  %v2806_v62 = vld [vmem:[#allocation5 + $0x290] sm:$0xf0]  ;;  %v3766_v2 = vld [vmem:[#allocation5 + $0x484] sm:$0xf]  ;;  %v3209_v4 = vor.u32 %v3802_v57, %v3206_v58  ;;  %v2604_v57 = vld [vmem:[#allocation5 + $0xe8] sm:$0xf] }
  0x61   :  { %1459 = vmatpush.bf16.msra.mxu0 %v2857_v26  ;;  %v2934_v1 = vld [vmem:[#allocation5 + $0x390] sm:$0xf0]  ;;  %v2809_v5 = vor.u32 %v3702_v59, %v2806_v62  ;;  %v3798_v7 = vld [vmem:[#allocation5 + $0x584] sm:$0xf]  ;;  %v3653_v58 = vld [vmem:[#allocation5 + $0xf4] sm:$0xf0] }
  0x62   :  { %1402 = vmatmul.bf16.vlgmr.msrb.gmra.mxu0 %v4196_v32  ;;  %v3062_v3 = vld [vmem:[#allocation5 + $0x490] sm:$0xf0]  ;;  %v2937_v6 = vor.u32 %v3734_v0, %v2934_v1  ;;  %v3698_v10 = vld [vmem:[#allocation5 + $0x264] sm:$0xf]  ;;  %v2732_v59 = vld [vmem:[#allocation5 + $0x1e8] sm:$0xf] }
  0x63   :  { %1453 = vmatpush.bf16.msra.mxu2 %v2617_v36  ;;  %1415 = vmatmul.bf16.vlgmr.msrb.gmra.mxu1 %v4198_v37  ;;  %v3190_v9 = vld [vmem:[#allocation5 + $0x590] sm:$0xf0]  ;;  %v3065_v11 = vor.u32 %v3766_v2, %v3062_v3  ;;  %v3730_v13 = vld [vmem:[#allocation5 + $0x364] sm:$0xf]  ;;  %v3685_v62 = vld [vmem:[#allocation5 + $0x1f4] sm:$0xf0] }
  0x64   :  { %1472 = vmatpush.bf16.msra.mxu1 %v2985_v27  ;;  %1485 = vmatpush.bf16.msra.mxu3 %v3113_v31  ;;  %v2790_v12 = vld [vmem:[#allocation5 + $0x270] sm:$0xf0]  ;;  %v3762_v15 = vld [vmem:[#allocation5 + $0x464] sm:$0xf]  ;;  %v3193_v17 = vor.u32 %v3798_v7, %v3190_v9  ;;  %v2605_v9 = vor.u32 %v3653_v58, %v2604_v57  ;;  %v3637_v57 = vld [vmem:[#allocation5 + $0x74] sm:$0xf0] }
  0x65   :  { %1441 = vmatmul.bf16.vlgmr.msrb.gmra.mxu3 %v4182_v56  ;;  %1460 = vmatpush.bf16.msra.mxu0 %v2841_v41  ;;  %v2918_v14 = vld [vmem:[#allocation5 + $0x370] sm:$0xf0]  ;;  %v2793_v18 = vor.u32 %v3698_v10, %v2790_v12  ;;  %v3794_v20 = vld [vmem:[#allocation5 + $0x564] sm:$0xf]  ;;  %v3717_v10 = vld [vmem:[#allocation5 + $0x2f4] sm:$0xf0] }
  0x66   :  { %1454 = vmatmul.bf16.vlgmr.msra.gmra.mxu2 %v4188_v8  ;;  %v3046_v16 = vld [vmem:[#allocation5 + $0x470] sm:$0xf0]  ;;  %v2921_v19 = vor.u32 %v3730_v13, %v2918_v14  ;;  %v3694_v22 = vld [vmem:[#allocation5 + $0x244] sm:$0xf]  ;;  %v3749_v12 = vld [vmem:[#allocation5 + $0x3f4] sm:$0xf0]  ;;  %v2733_v13 = vor.u32 %v3685_v62, %v2732_v59 }
  0x67   :  { %1498 = vmatpush.bf16.msrb.mxu2 %v3241_v40  ;;  %v3174_v21 = vld [vmem:[#allocation5 + $0x570] sm:$0xf0]  ;;  %v3049_v23 = vor.u32 %v3762_v15, %v3046_v16  ;;  %v3726_v25 = vld [vmem:[#allocation5 + $0x344] sm:$0xf]  ;;  %v2588_v15 = vld [vmem:[#allocation5 + $0xc8] sm:$0xf] }
  0x68   :  { %1473 = vmatpush.bf16.msra.mxu1 %v2969_v42  ;;  %1486 = vmatpush.bf16.msra.mxu3 %v3097_v46  ;;  %v2774_v24 = vld [vmem:[#allocation5 + $0x250] sm:$0xf0]  ;;  %v3758_v27 = vld [vmem:[#allocation5 + $0x444] sm:$0xf]  ;;  %v3177_v29 = vor.u32 %v3794_v20, %v3174_v21  ;;  %v3649_v16 = vld [vmem:[#allocation5 + $0xd4] sm:$0xf0] }
  0x69   :  { %1461 = vmatpush.bf16.msra.mxu0 %v2825_v53  ;;  %v2902_v26 = vld [vmem:[#allocation5 + $0x350] sm:$0xf0]  ;;  %v2777_v30 = vor.u32 %v3694_v22, %v2774_v24  ;;  %v3790_v33 = vld [vmem:[#allocation5 + $0x544] sm:$0xf]  ;;  %v2844_v22 = vld [vmem:[#allocation5 + $0x2c8] sm:$0xf] }
  0x6a   :  { %v3030_v28 = vld [vmem:[#allocation5 + $0x450] sm:$0xf0]  ;;  %v2905_v31 = vor.u32 %v3726_v25, %v2902_v26  ;;  %v3690_v35 = vld [vmem:[#allocation5 + $0x224] sm:$0xf]  ;;  %v3713_v24 = vld [vmem:[#allocation5 + $0x2d4] sm:$0xf0] }
  0x6b   :  { %1499 = vmatpush.bf16.msrb.mxu2 %v3225_v52  ;;  %v3158_v34 = vld [vmem:[#allocation5 + $0x550] sm:$0xf0]  ;;  %v3033_v36 = vor.u32 %v3758_v27, %v3030_v28  ;;  %v3722_v39 = vld [vmem:[#allocation5 + $0x324] sm:$0xf]  ;;  %v2972_v25 = vld [vmem:[#allocation5 + $0x3c8] sm:$0xf] }
  0x6c   :  { %1474 = vmatpush.bf16.msra.mxu1 %v2953_v55  ;;  %1487 = vmatpush.bf16.msra.mxu3 %v3081_v60  ;;  %v2758_v38 = vld [vmem:[#allocation5 + $0x230] sm:$0xf0]  ;;  %v3754_v41 = vld [vmem:[#allocation5 + $0x424] sm:$0xf]  ;;  %v3161_v43 = vor.u32 %v3790_v33, %v3158_v34  ;;  %v3745_v26 = vld [vmem:[#allocation5 + $0x3d4] sm:$0xf0]  ;;  %v2845_v33 = vor.u32 %v3713_v24, %v2844_v22 }
  0x6d   :  { %1462 = vmatpush.bf16.msra.mxu0 %v2809_v5  ;;  %v2886_v40 = vld [vmem:[#allocation5 + $0x330] sm:$0xf0]  ;;  %v3786_v44 = vld [vmem:[#allocation5 + $0x524] sm:$0xf]  ;;  %v2761_v46 = vor.u32 %v3690_v35, %v2758_v38  ;;  %v2572_v28 = vld [vmem:[#allocation5 + $0xa8] sm:$0xf]  ;;  %v2973_v34 = vor.u32 %v3745_v26, %v2972_v25 }
  0x6e   :  { %v3014_v42 = vld [vmem:[#allocation5 + $0x430] sm:$0xf0]  ;;  %v2889_v47 = vor.u32 %v3722_v39, %v2886_v40  ;;  %v3686_v48 = vld [vmem:[#allocation5 + $0x204] sm:$0xf]  ;;  %v2828_v35 = vld [vmem:[#allocation5 + $0x2a8] sm:$0xf] }
  0x6f   :  { %1500 = vmatpush.bf16.msrb.mxu2 %v3209_v4  ;;  %v3142_v45 = vld [vmem:[#allocation5 + $0x530] sm:$0xf0]  ;;  %v3718_v50 = vld [vmem:[#allocation5 + $0x304] sm:$0xf]  ;;  %v3017_v51 = vor.u32 %v3754_v41, %v3014_v42  ;;  %v3709_v38 = vld [vmem:[#allocation5 + $0x2b4] sm:$0xf0] }
  0x70   :  { %1475 = vmatpush.bf16.msra.mxu1 %v2937_v6  ;;  %1488 = vmatpush.bf16.msra.mxu3 %v3065_v11  ;;  %v2742_v49 = vld [vmem:[#allocation5 + $0x210] sm:$0xf0]  ;;  %v3750_v53 = vld [vmem:[#allocation5 + $0x404] sm:$0xf]  ;;  %v3145_v60 = vor.u32 %v3786_v44, %v3142_v45  ;;  %v2860_v6 = vld [vmem:[#allocation5 + $0x2e8] sm:$0xf] }
  0x71   :  { %1463 = vmatpush.bf16.msra.mxu0 %v2793_v18  ;;  %v2870_v52 = vld [vmem:[#allocation5 + $0x310] sm:$0xf0]  ;;  %v3814_v0 = vld [vmem:[#allocation5 + $0x604] sm:$0xf]  ;;  %v2745_v2 = vor.u32 %v3686_v48, %v2742_v49  ;;  %v2988_v11 = vld [vmem:[#allocation5 + $0x3e8] sm:$0xf]  ;;  %v2861_v20 = vor.u32 %v3717_v10, %v2860_v6 }
  0x72   :  { %v2998_v55 = vld [vmem:[#allocation5 + $0x410] sm:$0xf0]  ;;  %v2873_v3 = vor.u32 %v3718_v50, %v2870_v52  ;;  %v3782_v4 = vld [vmem:[#allocation5 + $0x504] sm:$0xf]  ;;  %v2716_v18 = vld [vmem:[#allocation5 + $0x1c8] sm:$0xf]  ;;  %v2989_v21 = vor.u32 %v3749_v12, %v2988_v11 }
  0x73   :  { %1501 = vmatpush.bf16.msrb.mxu2 %v3193_v17  ;;  %v3254_v1 = vld [vmem:[#allocation5 + $0x610] sm:$0xf0]  ;;  %v3001_v7 = vor.u32 %v3750_v53, %v2998_v55  ;;  %v2956_v39 = vld [vmem:[#allocation5 + $0x3a8] sm:$0xf]  ;;  %v3741_v40 = vld [vmem:[#allocation5 + $0x3b4] sm:$0xf0] }
  0x74   :  { %1476 = vmatpush.bf16.msra.mxu1 %v2921_v19  ;;  %1489 = vmatpush.bf16.msra.mxu3 %v3049_v23  ;;  %v3126_v5 = vld [vmem:[#allocation5 + $0x510] sm:$0xf0]  ;;  %v3257_v14 = vor.u32 %v3814_v0, %v3254_v1  ;;  %v3681_v19 = vld [vmem:[#allocation5 + $0x1d4] sm:$0xf0]  ;;  %v2589_v23 = vor.u32 %v3649_v16, %v2588_v15  ;;  %v2556_v42 = vld [vmem:[#allocation5 + $0x88] sm:$0xf] }
  0x75   :  { %1464 = vmatpush.bf16.msra.mxu0 %v2777_v30  ;;  %v3129_v17 = vor.u32 %v3782_v4, %v3126_v5  ;;  %v2717_v27 = vor.u32 %v3681_v19, %v2716_v18  ;;  %v2700_v30 = vld [vmem:[#allocation5 + $0x1a8] sm:$0xf]  ;;  %v3673_v45 = vld [vmem:[#allocation5 + $0x194] sm:$0xf0] }
  0x76   :  { %v2684_v44 = vld [vmem:[#allocation5 + $0x188] sm:$0xf]  ;;  %v3705_v50 = vld [vmem:[#allocation5 + $0x294] sm:$0xf0] }
  0x77   :  { %1502 = vmatpush.bf16.msrb.mxu2 %v3177_v29  ;;  %v3645_v29 = vld [vmem:[#allocation5 + $0xb4] sm:$0xf0]  ;;  %v2812_v48 = vld [vmem:[#allocation5 + $0x288] sm:$0xf]  ;;  %v2685_v53 = vor.u32 %v3673_v45, %v2684_v44 }
  0x78   :  { %1477 = vmatpush.bf16.msra.mxu1 %v2905_v31  ;;  %1490 = vmatpush.bf16.msra.mxu3 %v3033_v36  ;;  %v3677_v31 = vld [vmem:[#allocation5 + $0x1b4] sm:$0xf0]  ;;  %v2573_v36 = vor.u32 %v3645_v29, %v2572_v28  ;;  %v2540_v55 = vld [vmem:[#allocation5 + $0x68] sm:$0xf] }
  0x79   :  { %1465 = vmatpush.bf16.msra.mxu0 %v2761_v46  ;;  %v2701_v41 = vor.u32 %v3677_v31, %v2700_v30  ;;  %v2829_v46 = vor.u32 %v3709_v38, %v2828_v35  ;;  %v3737_v52 = vld [vmem:[#allocation5 + $0x394] sm:$0xf0]  ;;  %v2668_v58 = vld [vmem:[#allocation5 + $0x168] sm:$0xf] }
  0x7a   :  { %v3669_v59 = vld [vmem:[#allocation5 + $0x174] sm:$0xf0]  ;;  %v2796_v0 = vld [vmem:[#allocation5 + $0x268] sm:$0xf] }
  0x7b   :  { %1503 = vmatpush.bf16.msrb.mxu2 %v3161_v43  ;;  %v3641_v43 = vld [vmem:[#allocation5 + $0x94] sm:$0xf0]  ;;  %v2669_v5 = vor.u32 %v3669_v59, %v2668_v58  ;;  %v2524_v6 = vld [vmem:[#allocation5 + $0x48] sm:$0xf] }
  0x7c   :  { %1478 = vmatpush.bf16.msra.mxu1 %v2889_v47  ;;  %1491 = vmatpush.bf16.msra.mxu3 %v3017_v51  ;;  %v2957_v47 = vor.u32 %v3741_v40, %v2956_v39  ;;  %v2557_v49 = vor.u32 %v3641_v43, %v2556_v42  ;;  %v2940_v51 = vld [vmem:[#allocation5 + $0x388] sm:$0xf]  ;;  %v3701_v1 = vld [vmem:[#allocation5 + $0x274] sm:$0xf0] }
  0x7d   :  { %1466 = vmatpush.bf16.msra.mxu0 %v2745_v2  ;;  %v2941_v62 = vor.u32 %v3737_v52, %v2940_v51  ;;  %v2541_v2 = vor.u32 %v3637_v57, %v2540_v55  ;;  %v3733_v4 = vld [vmem:[#allocation5 + $0x374] sm:$0xf0]  ;;  %v2797_v11 = vor.u32 %v3701_v1, %v2796_v0  ;;  %v2908_v16 = vld [vmem:[#allocation5 + $0x348] sm:$0xf]  ;;  %v2606_v51 = vld [vmem:[#allocation5 + $0xf8] sm:$0xf0] }
  0x7e   :  { %v3665_v10 = vld [vmem:[#allocation5 + $0x154] sm:$0xf0]  ;;  %v2508_v19 = vld [vmem:[#allocation5 + $0x28] sm:$0xf] }
  0x7f   :  { %1504 = vmatpush.bf16.msrb.mxu2 %v3145_v60  ;;  %v2813_v60 = vor.u32 %v3705_v50, %v2812_v48  ;;  %v3697_v15 = vld [vmem:[#allocation5 + $0x254] sm:$0xf0]  ;;  %v2764_v25 = vld [vmem:[#allocation5 + $0x228] sm:$0xf]  ;;  %v3651_v48 = vld [vmem:[#allocation5 + $0xec] sm:$0xf] }
  0x80   :  { %1479 = vmatpush.bf16.msra.mxu1 %v2873_v3  ;;  %1492 = vmatpush.bf16.msra.mxu3 %v3001_v7  ;;  %v2924_v3 = vld [vmem:[#allocation5 + $0x368] sm:$0xf]  ;;  %v3633_v7 = vld [vmem:[#allocation5 + $0x54] sm:$0xf0]  ;;  %v2609_v1 = vor.u32 %v3651_v48, %v2606_v51 }
  0x81   :  { %1518 = vmatpush.bf16.msrb.mxu0 %v3257_v14  ;;  %v2925_v12 = vor.u32 %v3733_v4, %v2924_v3  ;;  %v2525_v14 = vor.u32 %v3633_v7, %v2524_v6  ;;  %v3661_v22 = vld [vmem:[#allocation5 + $0x134] sm:$0xf0]  ;;  %v2892_v28 = vld [vmem:[#allocation5 + $0x328] sm:$0xf]  ;;  %v3683_v3 = vld [vmem:[#allocation5 + $0x1ec] sm:$0xf] }
  0x82   :  { %1467 = vmatmul.bf16.vlgmr.msra.gmra.mxu0 %v4180_v54  ;;  %v3693_v26 = vld [vmem:[#allocation5 + $0x234] sm:$0xf0]  ;;  %v2492_v30 = vld [vmem:[#allocation5 + $0x8] sm:$0xf]  ;;  %v2734_v4 = vld [vmem:[#allocation5 + $0x1f8] sm:$0xf0] }
  0x83   :  { %1505 = vmatpush.bf16.msrb.mxu2 %v3129_v17  ;;  %1493 = vmatmul.bf16.vlgmr.msra.gmra.mxu3 %v4196_v32  ;;  %v3729_v17 = vld [vmem:[#allocation5 + $0x354] sm:$0xf0]  ;;  %v3244_v39 = vld [vmem:[#allocation5 + $0x5e8] sm:$0xf]  ;;  %v2765_v40 = vor.u32 %v3693_v26, %v2764_v25  ;;  %v3647_v6 = vld [vmem:[#allocation5 + $0xcc] sm:$0xf] }
  0x84   :  { %1524 = vmatpush.bf16.msrb.mxu1 %v2605_v9  ;;  %1537 = vmatpush.bf16.msrb.mxu3 %v2733_v13  ;;  %v2652_v9 = vld [vmem:[#allocation5 + $0x148] sm:$0xf]  ;;  %v2909_v24 = vor.u32 %v3729_v17, %v2908_v16  ;;  %v3725_v29 = vld [vmem:[#allocation5 + $0x334] sm:$0xf0]  ;;  %v2590_v7 = vld [vmem:[#allocation5 + $0xd8] sm:$0xf0] }
  0x85   :  { %1550 = vmatpush.bf16.msra.mxu0 %v2861_v20  ;;  %1480 = vmatmul.bf16.vlgmr.msra.gmra.mxu1 %v4184_v63  ;;  %v2780_v13 = vld [vmem:[#allocation5 + $0x248] sm:$0xf]  ;;  %v2653_v18 = vor.u32 %v3665_v10, %v2652_v9  ;;  %v3629_v20 = vld [vmem:[#allocation5 + $0x34] sm:$0xf0]  ;;  %v3679_v16 = vld [vmem:[#allocation5 + $0x1cc] sm:$0xf] }
  0x86   :  { %1506 = vmatmul.bf16.vlgmr.msrb.gmra.mxu2 %v4198_v37  ;;  %v3657_v35 = vld [vmem:[#allocation5 + $0x114] sm:$0xf0]  ;;  %v2748_v43 = vld [vmem:[#allocation5 + $0x208] sm:$0xf]  ;;  %v2718_v17 = vld [vmem:[#allocation5 + $0x1d8] sm:$0xf0] }
  0x87   :  { %1563 = vmatpush.bf16.msra.mxu2 %v2989_v21  ;;  %v2636_v21 = vld [vmem:[#allocation5 + $0x128] sm:$0xf]  ;;  %v3781_v38 = vld [vmem:[#allocation5 + $0x4f4] sm:$0xf0] }
  0x88   :  { %1525 = vmatpush.bf16.msrb.mxu1 %v2589_v23  ;;  %1538 = vmatpush.bf16.msrb.mxu3 %v2717_v27  ;;  %v2781_v23 = vor.u32 %v3697_v15, %v2780_v13  ;;  %v2509_v27 = vor.u32 %v3629_v20, %v2508_v19  ;;  %v2637_v31 = vor.u32 %v3661_v22, %v2636_v21  ;;  %v3813_v42 = vld [vmem:[#allocation5 + $0x5f4] sm:$0xf0]  ;;  %v3260_v52 = vld [vmem:[#allocation5 + $0x608] sm:$0xf]  ;;  %v3643_v19 = vld [vmem:[#allocation5 + $0xac] sm:$0xf] }
  0x89   :  { %1551 = vmatpush.bf16.msra.mxu0 %v2845_v33  ;;  %v3625_v33 = vld [vmem:[#allocation5 + $0x14] sm:$0xf0]  ;;  %v3245_v55 = vor.u32 %v3813_v42, %v3244_v39  ;;  %v3100_v57 = vld [vmem:[#allocation5 + $0x4c8] sm:$0xf]  ;;  %v2593_v15 = vor.u32 %v3647_v6, %v2590_v7  ;;  %v2574_v20 = vld [vmem:[#allocation5 + $0xb8] sm:$0xf0] }
  0x8a   :  { %v3689_v44 = vld [vmem:[#allocation5 + $0x214] sm:$0xf0]  ;;  %v2493_v45 = vor.u32 %v3625_v33, %v2492_v30  ;;  %v3084_v10 = vld [vmem:[#allocation5 + $0x4a8] sm:$0xf]  ;;  %v2558_v33 = vld [vmem:[#allocation5 + $0x98] sm:$0xf0] }
  0x8b   :  { %1564 = vmatpush.bf16.msra.mxu2 %v2973_v34  ;;  %v2620_v34 = vld [vmem:[#allocation5 + $0x108] sm:$0xf]  ;;  %v3777_v58 = vld [vmem:[#allocation5 + $0x4d4] sm:$0xf0]  ;;  %v2749_v59 = vor.u32 %v3689_v44, %v2748_v43  ;;  %v3671_v42 = vld [vmem:[#allocation5 + $0x18c] sm:$0xf] }
  0x8c   :  { %1526 = vmatpush.bf16.msrb.mxu1 %v2573_v36  ;;  %1539 = vmatpush.bf16.msrb.mxu3 %v2701_v41  ;;  %v3116_v36 = vld [vmem:[#allocation5 + $0x4e8] sm:$0xf]  ;;  %v2893_v41 = vor.u32 %v3725_v29, %v2892_v28  ;;  %v3809_v0 = vld [vmem:[#allocation5 + $0x5d4] sm:$0xf0]  ;;  %v3675_v28 = vld [vmem:[#allocation5 + $0x1ac] sm:$0xf] }
  0x8d   :  { %1552 = vmatpush.bf16.msra.mxu0 %v2829_v46  ;;  %v2876_v46 = vld [vmem:[#allocation5 + $0x308] sm:$0xf]  ;;  %v3117_v50 = vor.u32 %v3781_v38, %v3116_v36  ;;  %v3801_v26 = vld [vmem:[#allocation5 + $0x594] sm:$0xf0]  ;;  %v2702_v29 = vld [vmem:[#allocation5 + $0x1b8] sm:$0xf0] }
  0x8e   :  { %v3212_v13 = vld [vmem:[#allocation5 + $0x5a8] sm:$0xf]  ;;  %v3765_v36 = vld [vmem:[#allocation5 + $0x474] sm:$0xf0]  ;;  %v2705_v38 = vor.u32 %v3675_v28, %v2702_v29  ;;  %v2686_v43 = vld [vmem:[#allocation5 + $0x198] sm:$0xf0] }
  0x8f   :  { %1565 = vmatpush.bf16.msra.mxu2 %v2957_v47  ;;  %v3721_v47 = vld [vmem:[#allocation5 + $0x314] sm:$0xf0]  ;;  %v3068_v22 = vld [vmem:[#allocation5 + $0x488] sm:$0xf]  ;;  %v3663_v6 = vld [vmem:[#allocation5 + $0x14c] sm:$0xf] }
  0x90   :  { %1527 = vmatpush.bf16.msrb.mxu1 %v2557_v49  ;;  %1540 = vmatpush.bf16.msrb.mxu3 %v2685_v53  ;;  %v2621_v49 = vor.u32 %v3657_v35, %v2620_v34  ;;  %v3817_v53 = vld [vmem:[#allocation5 + $0x614] sm:$0xf0]  ;;  %v3196_v25 = vld [vmem:[#allocation5 + $0x588] sm:$0xf]  ;;  %v2654_v7 = vld [vmem:[#allocation5 + $0x158] sm:$0xf0] }
  0x91   :  { %1553 = vmatpush.bf16.msra.mxu0 %v2813_v60  ;;  %v2877_v60 = vor.u32 %v3721_v47, %v2876_v46  ;;  %v3197_v34 = vor.u32 %v3801_v26, %v3196_v25  ;;  %v3052_v35 = vld [vmem:[#allocation5 + $0x468] sm:$0xf]  ;;  %v2542_v46 = vld [vmem:[#allocation5 + $0x78] sm:$0xf0]  ;;  %v3623_v26 = vld [vmem:[#allocation5 + $0xc] sm:$0xf] }
  0x92   :  { %3267 = vmatmul.msk.bf16.vlgmr.msrb.gmra.mxu0 %vm1338_vm0, %v4192_v61  ;;  %v3180_v39 = vld [vmem:[#allocation5 + $0x568] sm:$0xf]  ;;  %v3053_v44 = vor.u32 %v3765_v36, %v3052_v35  ;;  %v3711_v35 = vld [vmem:[#allocation5 + $0x2cc] sm:$0xf]  ;;  %v2846_v36 = vld [vmem:[#allocation5 + $0x2d8] sm:$0xf0] }
  0x93   :  { %1566 = vmatpush.bf16.msra.mxu2 %v2941_v62  ;;  %v3228_v62 = vld [vmem:[#allocation5 + $0x5c8] sm:$0xf] }
  0x94   :  { %1528 = vmatpush.bf16.msrb.mxu1 %v2541_v2  ;;  %1541 = vmatpush.bf16.msrb.mxu3 %v2669_v5  ;;  %v3261_v2 = vor.u32 %v3817_v53, %v3260_v52  ;;  %v3101_v5 = vor.u32 %v3777_v58, %v3100_v57  ;;  %v3229_v9 = vor.u32 %v3809_v0, %v3228_v62  ;;  %v3036_v48 = vld [vmem:[#allocation5 + $0x448] sm:$0xf]  ;;  %v3793_v52 = vld [vmem:[#allocation5 + $0x554] sm:$0xf0]  ;;  %v2670_v57 = vld [vmem:[#allocation5 + $0x178] sm:$0xf0] }
  0x95   :  { %1554 = vmatpush.bf16.msra.mxu0 %v2797_v11  ;;  %v3773_v11 = vld [vmem:[#allocation5 + $0x4b4] sm:$0xf0]  ;;  %v3164_v51 = vld [vmem:[#allocation5 + $0x548] sm:$0xf] }
  0x96   :  { %v3165_v62 = vor.u32 %v3793_v52, %v3164_v51  ;;  %v3020_v0 = vld [vmem:[#allocation5 + $0x428] sm:$0xf]  ;;  %v3707_v51 = vld [vmem:[#allocation5 + $0x2ac] sm:$0xf]  ;;  %v2830_v52 = vld [vmem:[#allocation5 + $0x2b8] sm:$0xf0] }
  0x97   :  { %1567 = vmatpush.bf16.msra.mxu2 %v2925_v12  ;;  %v2737_v12 = vor.u32 %v3683_v3, %v2734_v4  ;;  %v3148_v3 = vld [vmem:[#allocation5 + $0x528] sm:$0xf]  ;;  %v3789_v4 = vld [vmem:[#allocation5 + $0x534] sm:$0xf0] }
  0x98   :  { %1529 = vmatpush.bf16.msrb.mxu1 %v2525_v14  ;;  %1542 = vmatpush.bf16.msrb.mxu3 %v2653_v18  ;;  %v3805_v14 = vld [vmem:[#allocation5 + $0x5b4] sm:$0xf0]  ;;  %v3085_v18 = vor.u32 %v3773_v11, %v3084_v10  ;;  %v3627_v10 = vld [vmem:[#allocation5 + $0x2c] sm:$0xf]  ;;  %v2510_v11 = vld [vmem:[#allocation5 + $0x38] sm:$0xf0] }
  0x99   :  { %1555 = vmatpush.bf16.msra.mxu0 %v2781_v23  ;;  %v3213_v21 = vor.u32 %v3805_v14, %v3212_v13  ;;  %v3769_v23 = vld [vmem:[#allocation5 + $0x494] sm:$0xf0]  ;;  %v3149_v13 = vor.u32 %v3789_v4, %v3148_v3  ;;  %v3703_v3 = vld [vmem:[#allocation5 + $0x28c] sm:$0xf]  ;;  %v2814_v4 = vld [vmem:[#allocation5 + $0x298] sm:$0xf0] }
  0x9a   :  { %v3069_v30 = vor.u32 %v3769_v23, %v3068_v22  ;;  %v3753_v14 = vld [vmem:[#allocation5 + $0x414] sm:$0xf0]  ;;  %v2990_v22 = vld [vmem:[#allocation5 + $0x3f8] sm:$0xf0]  ;;  %v3659_v23 = vld [vmem:[#allocation5 + $0x12c] sm:$0xf] }
  0x9b   :  { %1568 = vmatpush.bf16.msra.mxu2 %v2909_v24  ;;  %v2721_v24 = vor.u32 %v3679_v16, %v2718_v17  ;;  %v3785_v16 = vld [vmem:[#allocation5 + $0x514] sm:$0xf0]  ;;  %v2657_v17 = vor.u32 %v3663_v6, %v2654_v7  ;;  %v3735_v6 = vld [vmem:[#allocation5 + $0x38c] sm:$0xf]  ;;  %v2942_v7 = vld [vmem:[#allocation5 + $0x398] sm:$0xf0] }
  0x9c   :  { %1530 = vmatpush.bf16.msrb.mxu1 %v2509_v27  ;;  %1543 = vmatpush.bf16.msrb.mxu3 %v2637_v31  ;;  %v2577_v27 = vor.u32 %v3643_v19, %v2574_v20  ;;  %v3639_v31 = vld [vmem:[#allocation5 + $0x8c] sm:$0xf]  ;;  %v2862_v19 = vld [vmem:[#allocation5 + $0x2f8] sm:$0xf0] }
  0x9d   :  { %1556 = vmatpush.bf16.msra.mxu0 %v2765_v40  ;;  %v3797_v40 = vld [vmem:[#allocation5 + $0x574] sm:$0xf0]  ;;  %v3747_v20 = vld [vmem:[#allocation5 + $0x3ec] sm:$0xf] }
  0x9e   :  { %v3181_v47 = vor.u32 %v3797_v40, %v3180_v39  ;;  %v2974_v40 = vld [vmem:[#allocation5 + $0x3d8] sm:$0xf0] }
  0x9f   :  { %1569 = vmatpush.bf16.msra.mxu2 %v2893_v41  ;;  %v2561_v41 = vor.u32 %v3639_v31, %v2558_v33  ;;  %v3118_v31 = vld [vmem:[#allocation5 + $0x4f8] sm:$0xf0]  ;;  %v2993_v33 = vor.u32 %v3747_v20, %v2990_v22  ;;  %v3799_v22 = vld [vmem:[#allocation5 + $0x58c] sm:$0xf] }
  0xa0   :  { %1531 = vmatpush.bf16.msrb.mxu1 %v2493_v45  ;;  %1544 = vmatpush.bf16.msrb.mxu3 %v2621_v49  ;;  %v3635_v45 = vld [vmem:[#allocation5 + $0x6c] sm:$0xf]  ;;  %v3761_v49 = vld [vmem:[#allocation5 + $0x454] sm:$0xf0]  ;;  %v2926_v20 = vld [vmem:[#allocation5 + $0x378] sm:$0xf0] }
  0xa1   :  { %1557 = vmatpush.bf16.msra.mxu0 %v2749_v59  ;;  %v2545_v53 = vor.u32 %v3635_v45, %v2542_v46  ;;  %v3037_v58 = vor.u32 %v3761_v49, %v3036_v48  ;;  %v3631_v59 = vld [vmem:[#allocation5 + $0x4c] sm:$0xf]  ;;  %v3246_v45 = vld [vmem:[#allocation5 + $0x5f8] sm:$0xf0]  ;;  %v2849_v46 = vor.u32 %v3711_v35, %v2846_v36 }
  0xa2   :  { %v3102_v48 = vld [vmem:[#allocation5 + $0x4d8] sm:$0xf0]  ;;  %v3795_v35 = vld [vmem:[#allocation5 + $0x56c] sm:$0xf] }
  0xa3   :  { %1570 = vmatpush.bf16.msra.mxu2 %v2877_v60  ;;  %1545 = vmatmul.bf16.vlgmr.msrb.gmra.mxu3 %v4188_v8  ;;  %v2526_v60 = vld [vmem:[#allocation5 + $0x58] sm:$0xf0] }
  0xa4   :  { %1576 = vmatpush.bf16.msra.mxu1 %v3117_v50  ;;  %1589 = vmatpush.bf16.msra.mxu3 %v3245_v55  ;;  %v2689_v50 = vor.u32 %v3671_v42, %v2686_v43  ;;  %v3667_v55 = vld [vmem:[#allocation5 + $0x16c] sm:$0xf]  ;;  %v2622_v42 = vld [vmem:[#allocation5 + $0x118] sm:$0xf0] }
  0xa5   :  { %1609 = vmatpush.bf16.msrb.mxu0 %v3261_v2  ;;  %1532 = vmatmul.bf16.vlgmr.msrb.gmra.mxu1 %v4182_v56  ;;  %v2673_v2 = vor.u32 %v3667_v55, %v2670_v57  ;;  %v3739_v55 = vld [vmem:[#allocation5 + $0x3ac] sm:$0xf]  ;;  %v2958_v57 = vld [vmem:[#allocation5 + $0x3b8] sm:$0xf0] }
  0xa6   :  { %1558 = vmatmul.bf16.vlgmr.msra.gmra.mxu0 %v4180_v54  ;;  %1571 = vmatmul.bf16.vlgmr.msra.gmra.mxu2 %v4184_v63  ;;  %v3182_v36 = vld [vmem:[#allocation5 + $0x578] sm:$0xf0] }
  0xa7   :  { %1615 = vmatpush.bf16.msrb.mxu2 %v2609_v1  ;;  %v3757_v1 = vld [vmem:[#allocation5 + $0x434] sm:$0xf0] }
  0xa8   :  { %1577 = vmatpush.bf16.msra.mxu1 %v3101_v5  ;;  %1590 = vmatpush.bf16.msra.mxu3 %v3229_v9  ;;  %v2529_v5 = vor.u32 %v3631_v59, %v2526_v60  ;;  %v3021_v9 = vor.u32 %v3757_v1, %v3020_v0  ;;  %v3807_v59 = vld [vmem:[#allocation5 + $0x5cc] sm:$0xf]  ;;  %v3230_v60 = vld [vmem:[#allocation5 + $0x5d8] sm:$0xf0] }
  0xa9   :  { %1628 = vmatpush.bf16.msra.mxu0 %v2737_v12  ;;  %v3004_v12 = vld [vmem:[#allocation5 + $0x408] sm:$0xf]  ;;  %v3771_v0 = vld [vmem:[#allocation5 + $0x4ac] sm:$0xf]  ;;  %v3086_v1 = vld [vmem:[#allocation5 + $0x4b8] sm:$0xf0] }
  0xaa   :  { %v3005_v25 = vor.u32 %v3753_v14, %v3004_v12  ;;  %v2817_v12 = vor.u32 %v3703_v3, %v2814_v4  ;;  %v3070_v14 = vld [vmem:[#allocation5 + $0x498] sm:$0xf0]  ;;  %v3328_v4 = vld [vmem:[#allocation8 + $0x70] sm:$0xf] }
  0xab   :  { %1616 = vmatpush.bf16.msrb.mxu2 %v2593_v15  ;;  %v3132_v15 = vld [vmem:[#allocation5 + $0x508] sm:$0xf] }
  0xac   :  { %1578 = vmatpush.bf16.msra.mxu1 %v3085_v18  ;;  %1591 = vmatpush.bf16.msra.mxu3 %v3213_v21  ;;  %v3715_v18 = vld [vmem:[#allocation5 + $0x2ec] sm:$0xf]  ;;  %v2513_v21 = vor.u32 %v3627_v10, %v2510_v11  ;;  %v3133_v28 = vor.u32 %v3785_v16, %v3132_v15  ;;  %v3214_v11 = vld [vmem:[#allocation5 + $0x5b8] sm:$0xf0]  ;;  %v2945_v15 = vor.u32 %v3735_v6, %v2942_v7 }
  0xad   :  { %1629 = vmatpush.bf16.msra.mxu0 %v2721_v24  ;;  %v2638_v24 = vld [vmem:[#allocation5 + $0x138] sm:$0xf0]  ;;  %v2865_v29 = vor.u32 %v3715_v18, %v2862_v19  ;;  %v3803_v10 = vld [vmem:[#allocation5 + $0x5ac] sm:$0xf] }
  0xae   :  { %v3699_v16 = vld [vmem:[#allocation5 + $0x26c] sm:$0xf]  ;;  %v3217_v18 = vor.u32 %v3803_v10, %v3214_v11  ;;  %v3262_v6 = vld [vmem:[#allocation5 + $0x618] sm:$0xf0] }
  0xaf   :  { %1617 = vmatpush.bf16.msrb.mxu2 %v2577_v27  ;;  %v2494_v27 = vld [vmem:[#allocation5 + $0x18] sm:$0xf0]  ;;  %v3731_v19 = vld [vmem:[#allocation5 + $0x36c] sm:$0xf] }
  0xb0   :  { %1579 = vmatpush.bf16.msra.mxu1 %v3069_v30  ;;  %1592 = vmatpush.bf16.msra.mxu3 %v3197_v34  ;;  %v3779_v30 = vld [vmem:[#allocation5 + $0x4ec] sm:$0xf]  ;;  %v2641_v34 = vor.u32 %v3659_v23, %v2638_v24  ;;  %v2497_v39 = vor.u32 %v3623_v26, %v2494_v27  ;;  %v3198_v23 = vld [vmem:[#allocation5 + $0x598] sm:$0xf0] }
  0xb1   :  { %1630 = vmatpush.bf16.msra.mxu0 %v2705_v38  ;;  %v3743_v38 = vld [vmem:[#allocation5 + $0x3cc] sm:$0xf]  ;;  %v3121_v43 = vor.u32 %v3779_v30, %v3118_v31  ;;  %v3054_v26 = vld [vmem:[#allocation5 + $0x478] sm:$0xf0] }
  0xb2   :  { %v2977_v49 = vor.u32 %v3743_v38, %v2974_v40  ;;  %v3695_v27 = vld [vmem:[#allocation5 + $0x24c] sm:$0xf]  ;;  %v4224_v38 = vld [vmem:[#allocation7] sm:$0xf]  ;;  %v3833_v10 = vld [vmem:[#allocation8 + $0x74] sm:$0xf0] }
  0xb3   :  { %1618 = vmatpush.bf16.msrb.mxu2 %v2561_v41  ;;  %v3655_v41 = vld [vmem:[#allocation5 + $0x10c] sm:$0xf] }
  0xb4   :  { %1580 = vmatpush.bf16.msra.mxu1 %v3053_v44  ;;  %1593 = vmatpush.bf16.msra.mxu3 %v3181_v47  ;;  %v3811_v44 = vld [vmem:[#allocation5 + $0x5ec] sm:$0xf] }
  0xb5   :  { %1631 = vmatpush.bf16.msra.mxu0 %v2689_v50  ;;  %v3775_v47 = vld [vmem:[#allocation5 + $0x4cc] sm:$0xf]  ;;  %v2625_v50 = vor.u32 %v3655_v41, %v2622_v42  ;;  %v3038_v42 = vld [vmem:[#allocation5 + $0x458] sm:$0xf0] }
  0xb6   :  { %3268 = vmatmul.msk.bf16.vlgmr.msrb.gmra.mxu0 %vm1338_vm0, %v4192_v61  ;;  %v3727_v31 = vld [vmem:[#allocation5 + $0x34c] sm:$0xf] }
  0xb7   :  { %1619 = vmatpush.bf16.msrb.mxu2 %v2545_v53  ;;  %v3249_v53 = vor.u32 %v3811_v44, %v3246_v45  ;;  %v3759_v41 = vld [vmem:[#allocation5 + $0x44c] sm:$0xf] }
  0xb8   :  { %1581 = vmatpush.bf16.msra.mxu1 %v3037_v58  ;;  %1594 = vmatpush.bf16.msra.mxu3 %v3165_v62  ;;  %v3105_v58 = vor.u32 %v3775_v47, %v3102_v48  ;;  %v2833_v62 = vor.u32 %v3707_v51, %v2830_v52  ;;  %v3691_v45 = vld [vmem:[#allocation5 + $0x22c] sm:$0xf]  ;;  %v3185_v47 = vor.u32 %v3795_v35, %v3182_v36  ;;  %v350_v51 = vperm.slane %v4224_v38, 0  ;;  %v3312_v36 = vld [vmem:[#allocation8 + $0x50] sm:$0xf] }
  0xb9   :  { %1632 = vmatpush.bf16.msra.mxu0 %v2673_v2  ;;  %v2961_v2 = vor.u32 %v3739_v55, %v2958_v57  ;;  %v3723_v48 = vld [vmem:[#allocation5 + $0x32c] sm:$0xf]  ;;  %v3041_v52 = vor.u32 %v3759_v41, %v3038_v42  ;;  %v3166_v55 = vld [vmem:[#allocation5 + $0x558] sm:$0xf0]  ;;  %v3376_v42 = vld [vmem:[#allocation8 + $0xd0] sm:$0xf] }
  0xba   :  { %v3787_v11 = vld [vmem:[#allocation5 + $0x52c] sm:$0xf] }
  0xbb   :  { %1620 = vmatpush.bf16.msrb.mxu2 %v2529_v5  ;;  %v3233_v5 = vor.u32 %v3807_v59, %v3230_v60  ;;  %v3022_v59 = vld [vmem:[#allocation5 + $0x438] sm:$0xf0]  ;;  %v3687_v60 = vld [vmem:[#allocation5 + $0x20c] sm:$0xf] }
  0xbc   :  { %1582 = vmatpush.bf16.msra.mxu1 %v3021_v9  ;;  %1595 = vmatpush.bf16.msra.mxu3 %v3149_v13  ;;  %v3089_v9 = vor.u32 %v3771_v0, %v3086_v1  ;;  %v3767_v13 = vld [vmem:[#allocation5 + $0x48c] sm:$0xf]  ;;  %v2750_v0 = vld [vmem:[#allocation5 + $0x218] sm:$0xf0] }
  0xbd   :  { %1633 = vmatpush.bf16.msra.mxu0 %v2657_v17  ;;  %v2798_v17 = vld [vmem:[#allocation5 + $0x278] sm:$0xf0]  ;;  %v3719_v1 = vld [vmem:[#allocation5 + $0x30c] sm:$0xf] }
  0xbe   :  { %v2801_v24 = vor.u32 %v3699_v16, %v2798_v17  ;;  %v3006_v16 = vld [vmem:[#allocation5 + $0x418] sm:$0xf0] }
  0xbf   :  { %1621 = vmatpush.bf16.msrb.mxu2 %v2513_v21 }
  0xc0   :  { %1583 = vmatpush.bf16.msra.mxu1 %v3005_v25  ;;  %1596 = vmatpush.bf16.msra.mxu3 %v3133_v28  ;;  %v3763_v25 = vld [vmem:[#allocation5 + $0x46c] sm:$0xf]  ;;  %v2782_v28 = vld [vmem:[#allocation5 + $0x258] sm:$0xf0] }
  0xc1   :  { %1634 = vmatpush.bf16.msra.mxu0 %v2641_v34  ;;  %v3057_v34 = vor.u32 %v3763_v25, %v3054_v26  ;;  %v2785_v40 = vor.u32 %v3695_v27, %v2782_v28  ;;  %v3320_v26 = vld [vmem:[#allocation8 + $0x60] sm:$0xf]  ;;  %v3783_v27 = vld [vmem:[#allocation5 + $0x50c] sm:$0xf]  ;;  %v3134_v28 = vld [vmem:[#allocation5 + $0x518] sm:$0xf0] }
  0xc2   :  { %v3137_v35 = vor.u32 %v3783_v27, %v3134_v28 }
  0xc3   :  { %1584 = vmatmul.bf16.vlgmr.msra.gmra.mxu1 %v4196_v32  ;;  %1622 = vmatpush.bf16.msrb.mxu2 %v2497_v39  ;;  %v4220_v21 = vpop.f32.mrf.mxu0 }
  0xc4   :  { %1641 = vmatpush.bf16.msrb.mxu1 %v2865_v29  ;;  %1654 = vmatpush.bf16.msrb.mxu3 %v2993_v33  ;;  %v3201_v29 = vor.u32 %v3799_v22, %v3198_v23  ;;  %v2910_v33 = vld [vmem:[#allocation5 + $0x358] sm:$0xf0]  ;;  %v1352_v22 = vadd.f32 %v4220_v21, %v350_v51  ;;  %v3329_v23 = vor.u32 %v3833_v10, %v3328_v4 }
  0xc5   :  { %1597 = vmatmul.bf16.vlgmr.msra.gmra.mxu3 %v4198_v37  ;;  %1635 = vmatpush.bf16.msra.mxu0 %v2625_v50 }
  0xc6   :  { %1623 = vmatmul.bf16.vlgmr.msrb.gmra.mxu2 %v4182_v56  ;;  %v3073_v56 = vor.u32 %v3767_v13, %v3070_v14  ;;  %v4222_v30 = vpop.f32.mrf.mxu1  ;;  %v2753_v14 = vor.u32 %v3687_v60, %v2750_v0  ;;  %v3288_v0 = vld [vmem:[#allocation8 + $0x20] sm:$0xf] }
  0xc7   :  { %1667 = vmatpush.bf16.msra.mxu2 %v3121_v43  ;;  %v2913_v43 = vor.u32 %v3727_v31, %v2910_v33  ;;  %v3384_v31 = vld [vmem:[#allocation8 + $0xe0] sm:$0xf]  ;;  %v3847_v33 = vld [vmem:[#allocation8 + $0xe4] sm:$0xf0] }
  0xc8   :  { %1642 = vmatpush.bf16.msrb.mxu1 %v2849_v46  ;;  %1655 = vmatpush.bf16.msrb.mxu3 %v2977_v49  ;;  %v2766_v46 = vld [vmem:[#allocation5 + $0x238] sm:$0xf0]  ;;  %v3385_v41 = vor.u32 %v3847_v33, %v3384_v31  ;;  %v3322_v31 = vld [vmem:[#allocation8 + $0x68] sm:$0xf0] }
  0xc9   :  { %1680 = vmatpush.bf16.msrb.mxu0 %v3249_v53  ;;  %v4226_v39 = vpop.f32.mrf.mxu2  ;;  %v2894_v49 = vld [vmem:[#allocation5 + $0x338] sm:$0xf0]  ;;  %v3791_v53 = vld [vmem:[#allocation5 + $0x54c] sm:$0xf]  ;;  %v2769_v57 = vor.u32 %v3691_v45, %v2766_v46  ;;  %v3304_v46 = vld [vmem:[#allocation8 + $0x40] sm:$0xf] }
  0xca   :  { %1636 = vmatmul.bf16.vlgmr.msra.gmra.mxu0 %v4188_v8  ;;  %v2929_v8 = vor.u32 %v3731_v19, %v2926_v20  ;;  %v4228_v44 = vpop.f32.mrf.mxu3  ;;  %v3169_v3 = vor.u32 %v3791_v53, %v3166_v55  ;;  %v3392_v20 = vld [vmem:[#allocation8 + $0xf0] sm:$0xf]  ;;  %v3825_v53 = vld [vmem:[#allocation8 + $0x34] sm:$0xf0] }
  0xcb   :  { %1668 = vmatpush.bf16.msra.mxu2 %v3105_v58  ;;  %v1353_v50 = vpop.f32.mrf.mxu0  ;;  %v3755_v58 = vld [vmem:[#allocation5 + $0x42c] sm:$0xf] }
  0xcc   :  { %1643 = vmatpush.bf16.msrb.mxu1 %v2833_v62  ;;  %1656 = vmatpush.bf16.msrb.mxu3 %v2961_v2  ;;  %v2897_v62 = vor.u32 %v3723_v48, %v2894_v49  ;;  %v2878_v2 = vld [vmem:[#allocation5 + $0x318] sm:$0xf0]  ;;  %v3368_v49 = vld [vmem:[#allocation8 + $0xc0] sm:$0xf]  ;;  %v3843_v50 = vld [vmem:[#allocation8 + $0xc4] sm:$0xf0] }
  0xcd   :  { %1681 = vmatpush.bf16.msrb.mxu0 %v3233_v5  ;;  %v3815_v5 = vld [vmem:[#allocation5 + $0x60c] sm:$0xf]  ;;  %v2881_v17 = vor.u32 %v3719_v1, %v2878_v2 }
  0xce   :  { %v1366_v7 = vpop.f32.mrf.mxu1  ;;  %v3823_v1 = vld [vmem:[#allocation8 + $0x24] sm:$0xf0] }
  0xcf   :  { %1669 = vmatpush.bf16.msra.mxu2 %v3089_v9  ;;  %v3025_v9 = vor.u32 %v3755_v58, %v3022_v59  ;;  %v3360_v58 = vld [vmem:[#allocation8 + $0xb0] sm:$0xf]  ;;  %v3841_v59 = vld [vmem:[#allocation8 + $0xb4] sm:$0xf0]  ;;  %v3289_v4 = vor.u32 %v3823_v1, %v3288_v0  ;;  %v3448_v0 = vld [vmem:[#allocation8 + $0x160] sm:$0xf] }
  0xd0   :  { %1644 = vmatpush.bf16.msrb.mxu1 %v2817_v12  ;;  %1657 = vmatpush.bf16.msrb.mxu3 %v2945_v15  ;;  %v3150_v12 = vld [vmem:[#allocation5 + $0x538] sm:$0xf0]  ;;  %v3751_v15 = vld [vmem:[#allocation5 + $0x40c] sm:$0xf] }
  0xd1   :  { %1682 = vmatpush.bf16.msrb.mxu0 %v3217_v18  ;;  %v1379_v13 = vpop.f32.mrf.mxu2  ;;  %v3265_v18 = vor.u32 %v3815_v5, %v3262_v6  ;;  %v3009_v25 = vor.u32 %v3751_v15, %v3006_v16  ;;  %v3280_v6 = vld [vmem:[#allocation8 + $0x10] sm:$0xf]  ;;  %v3821_v7 = vld [vmem:[#allocation8 + $0x14] sm:$0xf0] }
  0xd2   :  { %v1392_v19 = vpop.f32.mrf.mxu3  ;;  %v3344_v13 = vld [vmem:[#allocation8 + $0x90] sm:$0xf]  ;;  %v3281_v15 = vor.u32 %v3821_v7, %v3280_v6  ;;  %v3290_v6 = vld [vmem:[#allocation8 + $0x28] sm:$0xf0] }
  0xd3   :  { %1670 = vmatpush.bf16.msra.mxu2 %v3073_v56  ;;  %v3849_v56 = vld [vmem:[#allocation8 + $0xf4] sm:$0xf0]  ;;  %v3832_v19 = vld [vmem:[#allocation8 + $0x74] sm:$0xf] }
  0xd4   :  { %1645 = vmatpush.bf16.msrb.mxu1 %v2801_v24  ;;  %1658 = vmatpush.bf16.msrb.mxu3 %v2929_v8  ;;  %v3153_v24 = vor.u32 %v3787_v11, %v3150_v12  ;;  %v3831_v8 = vld [vmem:[#allocation8 + $0x64] sm:$0xf0] }
  0xd5   :  { %1683 = vmatpush.bf16.msrb.mxu0 %v3201_v29  ;;  %v3393_v29 = vor.u32 %v3849_v56, %v3392_v20  ;;  %v3321_v21 = vor.u32 %v3831_v8, %v3320_v26  ;;  %v3330_v20 = vld [vmem:[#allocation8 + $0x78] sm:$0xf0] }
  0xd6   :  { %v3394_v26 = vld [vmem:[#allocation8 + $0xf8] sm:$0xf0]  ;;  %v3333_v27 = vor.u32 %v3832_v19, %v3330_v20 }
  0xd7   :  { %1671 = vmatpush.bf16.msra.mxu2 %v3057_v34  ;;  %v1365_v34 = vadd.f32 %v4222_v30, %v1352_v22 }
  0xd8   :  { %1646 = vmatpush.bf16.msrb.mxu1 %v2785_v40  ;;  %1659 = vmatpush.bf16.msrb.mxu3 %v2913_v43  ;;  %v3829_v40 = vld [vmem:[#allocation8 + $0x54] sm:$0xf0] }
  0xd9   :  { %1684 = vmatpush.bf16.msrb.mxu0 %v3185_v47  ;;  %v3845_v43 = vld [vmem:[#allocation8 + $0xd4] sm:$0xf0]  ;;  %v1378_v45 = vadd.f32 %v4226_v39, %v1365_v34  ;;  %v3313_v30 = vor.u32 %v3829_v40, %v3312_v36  ;;  %v3827_v47 = vld [vmem:[#allocation8 + $0x44] sm:$0xf0]  ;;  %v3296_v39 = vld [vmem:[#allocation8 + $0x30] sm:$0xf] }
  0xda   :  { %v3377_v48 = vor.u32 %v3845_v43, %v3376_v42  ;;  %v3305_v51 = vor.u32 %v3827_v47, %v3304_v46  ;;  %v3297_v60 = vor.u32 %v3825_v53, %v3296_v39  ;;  %v3386_v36 = vld [vmem:[#allocation8 + $0xe8] sm:$0xf0]  ;;  %v3828_v42 = vld [vmem:[#allocation8 + $0x54] sm:$0xf]  ;;  %v3314_v43 = vld [vmem:[#allocation8 + $0x58] sm:$0xf0] }
  0xdb   :  { %1672 = vmatpush.bf16.msra.mxu2 %v3041_v52  ;;  %v3844_v47 = vld [vmem:[#allocation8 + $0xd4] sm:$0xf] }
  0xdc   :  { %1647 = vmatpush.bf16.msrb.mxu1 %v2769_v57  ;;  %1660 = vmatpush.bf16.msrb.mxu3 %v2897_v62  ;;  %v3369_v57 = vor.u32 %v3843_v50, %v3368_v49  ;;  %v3317_v49 = vor.u32 %v3828_v42, %v3314_v43  ;;  %v3865_v50 = vld [vmem:[#allocation8 + $0x174] sm:$0xf0]  ;;  %v3338_v42 = vld [vmem:[#allocation8 + $0x88] sm:$0xf0]  ;;  %v3416_v43 = vld [vmem:[#allocation8 + $0x120] sm:$0xf] }
  0xdd   :  { %1685 = vmatpush.bf16.msrb.mxu0 %v3169_v3  ;;  %v3839_v3 = vld [vmem:[#allocation8 + $0xa4] sm:$0xf0] }
  0xdf   :  { %1673 = vmatpush.bf16.msra.mxu2 %v3025_v9  ;;  %v1403_v52 = vpop.f32.mrf.mxu0 }
  0xe0   :  { %1648 = vmatpush.bf16.msrb.mxu1 %v2753_v14  ;;  %1661 = vmatpush.bf16.msrb.mxu3 %v2881_v17  ;;  %v3837_v14 = vld [vmem:[#allocation8 + $0x94] sm:$0xf0]  ;;  %v3272_v17 = vld [vmem:[#allocation8] sm:$0xf] }
  0xe1   :  { %1686 = vmatpush.bf16.msrb.mxu0 %v3153_v24  ;;  %v3345_v56 = vor.u32 %v3837_v14, %v3344_v13  ;;  %v3440_v13 = vld [vmem:[#allocation8 + $0x150] sm:$0xf]  ;;  %v3861_v14 = vld [vmem:[#allocation8 + $0x154] sm:$0xf0] }
  0xe3   :  { %1649 = vmatmul.bf16.vlgmr.msrb.gmra.mxu1 %v4180_v54  ;;  %1674 = vmatpush.bf16.msra.mxu2 %v3009_v25  ;;  %v1429_v54 = vpop.f32.mrf.mxu2  ;;  %v3848_v25 = vld [vmem:[#allocation8 + $0xf4] sm:$0xf] }
  0xe4   :  { %1700 = vmatpush.bf16.msra.mxu1 %v3265_v18  ;;  %2108 = vmatpush.bf16.msra.mxu3 %v3329_v23  ;;  %v3819_v18 = vld [vmem:[#allocation8 + $0x4] sm:$0xf0]  ;;  %v3397_v34 = vor.u32 %v3848_v25, %v3394_v26  ;;  %v3432_v25 = vld [vmem:[#allocation8 + $0x140] sm:$0xf] }
  0xe5   :  { %1662 = vmatmul.bf16.vlgmr.msrb.gmra.mxu3 %v4184_v63  ;;  %1687 = vmatpush.bf16.msrb.mxu0 %v3137_v35  ;;  %v1391_v63 = vadd.f32 %v4228_v44, %v1378_v45  ;;  %v3361_v44 = vor.u32 %v3841_v59, %v3360_v58  ;;  %v3835_v23 = vld [vmem:[#allocation8 + $0x84] sm:$0xf0]  ;;  %v3273_v24 = vor.u32 %v3819_v18, %v3272_v17  ;;  %v3846_v35 = vld [vmem:[#allocation8 + $0xe4] sm:$0xf]  ;;  %v3824_v58 = vld [vmem:[#allocation8 + $0x34] sm:$0xf] }
  0xe6   :  { %1675 = vmatmul.bf16.vlgmr.msra.gmra.mxu2 %v4196_v32  ;;  %v1416_v32 = vpop.f32.mrf.mxu1  ;;  %v3298_v59 = vld [vmem:[#allocation8 + $0x38] sm:$0xf0]  ;;  %v3820_v17 = vld [vmem:[#allocation8 + $0x14] sm:$0xf]  ;;  %v3859_v26 = vld [vmem:[#allocation8 + $0x144] sm:$0xf0] }
  0xe7   :  { %v1404_v55 = vadd.f32 %v1403_v52, %v1391_v63  ;;  %v1405_v9 = vpop.f32.mrf.mxu0  ;;  %v3826_v63 = vld [vmem:[#allocation8 + $0x44] sm:$0xf]  ;;  %v3282_v18 = vld [vmem:[#allocation8 + $0x18] sm:$0xf0] }
  0xe8   :  { %2121 = vmatpush.bf16.msrb.mxu1 %v3393_v29  ;;  %2109 = vmatpush.bf16.msra.mxu3 %v3321_v21  ;;  %v1442_v10 = vpop.f32.mrf.mxu3  ;;  %v3830_v29 = vld [vmem:[#allocation8 + $0x64] sm:$0xf]  ;;  %v351_v21 = vperm.slane %v4224_v38, 1 }
  0xe9   :  { %1688 = vmatmul.bf16.vlgmr.msrb.gmra.mxu0 %v4198_v37  ;;  %v1417_v62 = vadd.f32 %v1416_v32, %v1404_v55  ;;  %v3352_v37 = vld [vmem:[#allocation8 + $0xa0] sm:$0xf]  ;;  %v3842_v55 = vld [vmem:[#allocation8 + $0xc4] sm:$0xf]  ;;  %v3370_v32 = vld [vmem:[#allocation8 + $0xc8] sm:$0xf0] }
  0xea   :  { %v3353_v12 = vor.u32 %v3839_v3, %v3352_v37  ;;  %v1443_v46 = vadd.f32 %v1442_v10, %v351_v21  ;;  %v3863_v37 = vld [vmem:[#allocation8 + $0x164] sm:$0xf0]  ;;  %v3301_v3 = vor.u32 %v3824_v58, %v3298_v59  ;;  %v3838_v10 = vld [vmem:[#allocation8 + $0xa4] sm:$0xf] }
  0xeb   :  { %v1431_v2 = vpop.f32.mrf.mxu2  ;;  %v1430_v5 = vadd.f32 %v1429_v54, %v1417_v62  ;;  %v3378_v54 = vld [vmem:[#allocation8 + $0xd8] sm:$0xf0]  ;;  %v3373_v62 = vor.u32 %v3842_v55, %v3370_v32  ;;  %v3851_v58 = vld [vmem:[#allocation8 + $0x104] sm:$0xf0] }
  0xec   :  { %2122 = vmatpush.bf16.msrb.mxu1 %v3385_v41  ;;  %2110 = vmatpush.bf16.msra.mxu3 %v3313_v30  ;;  %v3325_v41 = vor.u32 %v3830_v29, %v3322_v31  ;;  %v3389_v30 = vor.u32 %v3846_v35, %v3386_v36  ;;  %v3381_v39 = vor.u32 %v3844_v47, %v3378_v54  ;;  %v3840_v2 = vld [vmem:[#allocation8 + $0xb4] sm:$0xf]  ;;  %v3857_v29 = vld [vmem:[#allocation8 + $0x134] sm:$0xf0]  ;;  %v3818_v31 = vld [vmem:[#allocation8 + $0x4] sm:$0xf] }
  0xed   :  { %v1706_v16 = vmul.f32 0.2, %v1430_v5  ;;  %v3834_v35 = vld [vmem:[#allocation8 + $0x84] sm:$0xf] }
  0xee   :  { %v1418_v11 = vpop.f32.mrf.mxu1  ;;  %v3341_v54 = vor.u32 %v3834_v35, %v3338_v42  ;;  %v3852_v35 = vld [vmem:[#allocation8 + $0x114] sm:$0xf] }
  0xef   :  { %v1710_v8 = vmax.f32 %v1430_v5, %v1706_v16  ;;  %v3822_v5 = vld [vmem:[#allocation8 + $0x24] sm:$0xf]  ;;  %v3441_v16 = vor.u32 %v3861_v14, %v3440_v13 }
  0xf0   :  { %2123 = vmatpush.bf16.msrb.mxu1 %v3377_v48  ;;  %2111 = vmatpush.bf16.msra.mxu3 %v3305_v51  ;;  %v1444_v28 = vpop.f32.mrf.mxu3  ;;  %v3456_v48 = vld [vmem:[#allocation8 + $0x170] sm:$0xf]  ;;  %v3306_v51 = vld [vmem:[#allocation8 + $0x48] sm:$0xf0]  ;;  %v3858_v13 = vld [vmem:[#allocation8 + $0x144] sm:$0xf] }
  0xf1   :  { %v4242_v40 = vpack.c.bf16 %v1710_v8, %v1710_v8  ;;  %v3457_v52 = vor.u32 %v3865_v50, %v3456_v48  ;;  %v3285_v8 = vor.u32 %v3820_v17, %v3282_v18  ;;  %v3424_v28 = vld [vmem:[#allocation8 + $0x130] sm:$0xf] }
  0xf2   :  { %v3425_v36 = vor.u32 %v3857_v29, %v3424_v28  ;;  %v3418_v29 = vld [vmem:[#allocation8 + $0x128] sm:$0xf0] }
  0xf3   :  { %3269 = vmatmul.msk.bf16.vlgmr.msra.gmra.mxu1 %vm1338_vm0, %v4192_v61  ;;  %v1455_v22 = vpop.f32.mrf.mxu2  ;;  %v3336_v61 = vld [vmem:[#allocation8 + $0x80] sm:$0xf]  ;;  %2134 = vmatpush.bf16.msrb.mxu2 %v3457_v52 }
  0xf4   :  { %2124 = vmatpush.bf16.msrb.mxu1 %v3369_v57  ;;  %2112 = vmatpush.bf16.msra.mxu3 %v3297_v60  ;;  %v3337_v33 = vor.u32 %v3835_v23, %v3336_v61  ;;  %v1456_v53 = vadd.f32 %v1455_v22, %v1443_v46  ;;  %v3309_v57 = vor.u32 %v3826_v63, %v3306_v51  ;;  %v3836_v22 = vld [vmem:[#allocation8 + $0x94] sm:$0xf]  ;;  %v3408_v63 = vld [vmem:[#allocation8 + $0x110] sm:$0xf]  ;;  %v3853_v51 = vld [vmem:[#allocation8 + $0x114] sm:$0xf0] }
  0xf8   :  { %2125 = vmatpush.bf16.msrb.mxu1 %v3361_v44  ;;  %2113 = vmatpush.bf16.msra.mxu3 %v3289_v4  ;;  %v3362_v44 = vld [vmem:[#allocation8 + $0xb8] sm:$0xf0]  ;;  %v3449_v4 = vor.u32 %v3863_v37, %v3448_v0 }
  0xf9   :  { %v3365_v9 = vor.u32 %v3840_v2, %v3362_v44  ;;  %v3450_v2 = vld [vmem:[#allocation8 + $0x168] sm:$0xf0] }
  0xfa   :  { %2135 = vmatpush.bf16.msrb.mxu2 %v3449_v4  ;;  %v3520_v4 = vld [vmem:[#allocation8 + $0x1f0] sm:$0xf] }
  0xfb   :  { %v1457_v45 = vpop.f32.mrf.mxu2 }
  0xfc   :  { %2126 = vmatpush.bf16.msrb.mxu1 %v3353_v12  ;;  %2114 = vmatpush.bf16.msra.mxu3 %v3281_v15  ;;  %v3354_v12 = vld [vmem:[#allocation8 + $0xa8] sm:$0xf0]  ;;  %v3293_v15 = vor.u32 %v3822_v5, %v3290_v6  ;;  %v3855_v45 = vld [vmem:[#allocation8 + $0x124] sm:$0xf0]  ;;  %v3860_v5 = vld [vmem:[#allocation8 + $0x154] sm:$0xf] }
  0xfd   :  { %v3417_v48 = vor.u32 %v3855_v45, %v3416_v43 }
  0xfe   :  { %2136 = vmatpush.bf16.msrb.mxu2 %v3441_v16 }
  0xff   :  { %v1468_v60 = vpop.f32.mrf.mxu0 }
 0x100   :  { %2127 = vmatpush.bf16.msrb.mxu1 %v3345_v56  ;;  %2115 = vmatpush.bf16.msra.mxu3 %v3273_v24  ;;  %v1469_v1 = vadd.f32 %v1468_v60, %v1456_v53  ;;  %v3357_v56 = vor.u32 %v3838_v10, %v3354_v12  ;;  %v3346_v24 = vld [vmem:[#allocation8 + $0x98] sm:$0xf0]  ;;  %v3864_v60 = vld [vmem:[#allocation8 + $0x174] sm:$0xf]  ;;  %v3879_v12 = vld [vmem:[#allocation8 + $0x1e4] sm:$0xf0] }
 0x101   :  { %v3349_v21 = vor.u32 %v3836_v22, %v3346_v24 }
 0x102   :  { %v1481_v7 = vpop.f32.mrf.mxu1 }
 0x103   :  { %2116 = vmatmul.bf16.vlgmr.msra.gmra.mxu3 %v4242_v40  ;;  %v1482_v11 = vadd.f32 %v1481_v7, %v1469_v1  ;;  %v3862_v1 = vld [vmem:[#allocation8 + $0x164] sm:$0xf]  ;;  %v3442_v7 = vld [vmem:[#allocation8 + $0x158] sm:$0xf0] }
 0x104   :  { %2160 = vmatpush.bf16.msrb.mxu3 %v3333_v27  ;;  %2128 = vmatpush.bf16.msrb.mxu1 %v3337_v33  ;;  %v3433_v27 = vor.u32 %v3859_v26, %v3432_v25  ;;  %v3274_v33 = vld [vmem:[#allocation8 + $0x8] sm:$0xf0]  ;;  %v3453_v44 = vor.u32 %v3862_v1, %v3450_v2  ;;  %v3496_v25 = vld [vmem:[#allocation8 + $0x1c0] sm:$0xf]  ;;  %v3875_v26 = vld [vmem:[#allocation8 + $0x1c4] sm:$0xf0] }
 0x105   :  { %v3497_v28 = vor.u32 %v3875_v26, %v3496_v25  ;;  %v3482_v25 = vld [vmem:[#allocation8 + $0x1a8] sm:$0xf0]  ;;  %v353_v26 = vperm.slane %v4224_v38, 3 }
 0x106   :  { %v1494_v20 = vpop.f32.mrf.mxu3  ;;  %2137 = vmatpush.bf16.msrb.mxu2 %v3433_v27 }
 0x107   :  { %v1470_v19 = vpop.f32.mrf.mxu0  ;;  %v1495_v61 = vadd.f32 %v1494_v20, %v1482_v11  ;;  %v3512_v11 = vld [vmem:[#allocation8 + $0x1e0] sm:$0xf]  ;;  %v3504_v20 = vld [vmem:[#allocation8 + $0x1d0] sm:$0xf] }
 0x108   :  { %2173 = vmatpush.bf16.msra.mxu1 %v3397_v34  ;;  %2161 = vmatpush.bf16.msrb.mxu3 %v3325_v41  ;;  %v3513_v14 = vor.u32 %v3879_v12, %v3512_v11  ;;  %v3876_v11 = vld [vmem:[#allocation8 + $0x1d4] sm:$0xf]  ;;  %v3506_v12 = vld [vmem:[#allocation8 + $0x1d8] sm:$0xf0] }
 0x109   :  { %v1507_v23 = vpop.f32.mrf.mxu2 }
 0x10a   :  { %v1483_v34 = vpop.f32.mrf.mxu1  ;;  %v1508_v41 = vadd.f32 %v1507_v23, %v1495_v61  ;;  %2138 = vmatpush.bf16.msrb.mxu2 %v3425_v36  ;;  %v3856_v61 = vld [vmem:[#allocation8 + $0x134] sm:$0xf]  ;;  %v3426_v23 = vld [vmem:[#allocation8 + $0x138] sm:$0xf0] }
 0x10b   :  { %v3429_v24 = vor.u32 %v3856_v61, %v3426_v23  ;;  %v3488_v34 = vld [vmem:[#allocation8 + $0x1b0] sm:$0xf]  ;;  %v3410_v36 = vld [vmem:[#allocation8 + $0x118] sm:$0xf0] }
 0x10c   :  { %2174 = vmatpush.bf16.msra.mxu1 %v3389_v30  ;;  %2162 = vmatpush.bf16.msrb.mxu3 %v3317_v49  ;;  %v3277_v30 = vor.u32 %v3818_v31, %v3274_v33  ;;  %v352_v31 = vperm.slane %v4224_v38, 2  ;;  %v3490_v61 = vld [vmem:[#allocation8 + $0x1b8] sm:$0xf0] }
 0x10e   :  { %v1496_v47 = vpop.f32.mrf.mxu3  ;;  %2139 = vmatpush.bf16.msrb.mxu2 %v3417_v48  ;;  %v3850_v48 = vld [vmem:[#allocation8 + $0x104] sm:$0xf] }
 0x10f   :  { %v1520_v46 = vpop.f32.mrf.mxu0  ;;  %v3480_v47 = vld [vmem:[#allocation8 + $0x1a0] sm:$0xf] }
 0x110   :  { %2175 = vmatpush.bf16.msra.mxu1 %v3381_v39  ;;  %2163 = vmatpush.bf16.msrb.mxu3 %v3309_v57  ;;  %v1521_v49 = vadd.f32 %v1520_v46, %v1508_v41  ;;  %v3409_v39 = vor.u32 %v3853_v51, %v3408_v63  ;;  %v3400_v57 = vld [vmem:[#allocation8 + $0x100] sm:$0xf] }
 0x111   :  { %v1509_v50 = vpop.f32.mrf.mxu2  ;;  %v3401_v59 = vor.u32 %v3851_v58, %v3400_v57  ;;  %v3464_v58 = vld [vmem:[#allocation8 + $0x180] sm:$0xf] }
 0x112   :  { %v1707_v52 = vmul.f32 0.2, %v1521_v49  ;;  %2140 = vmatpush.bf16.msrb.mxu2 %v3409_v39  ;;  %v3402_v50 = vld [vmem:[#allocation8 + $0x108] sm:$0xf0] }
 0x113   :  { %v3405_v51 = vor.u32 %v3850_v48, %v3402_v50 }
 0x114   :  { %2176 = vmatpush.bf16.msra.mxu1 %v3373_v62  ;;  %2164 = vmatpush.bf16.msrb.mxu3 %v3301_v3  ;;  %v1711_v53 = vmax.f32 %v1521_v49, %v1707_v52  ;;  %v3458_v62 = vld [vmem:[#allocation8 + $0x178] sm:$0xf0] }
 0x115   :  { %v3461_v0 = vor.u32 %v3864_v60, %v3458_v62  ;;  %v3880_v62 = vld [vmem:[#allocation8 + $0x1f4] sm:$0xf] }
 0x116   :  { %v1715_v55 = vpack.c.bf16 %v1711_v53, %v1711_v53  ;;  %2141 = vmatpush.bf16.msrb.mxu2 %v3401_v59  ;;  %v3472_v53 = vld [vmem:[#allocation8 + $0x190] sm:$0xf]  ;;  %v3867_v59 = vld [vmem:[#allocation8 + $0x184] sm:$0xf0] }
 0x117   :  { %v1522_v32 = vpop.f32.mrf.mxu0  ;;  %v3465_v60 = vor.u32 %v3867_v59, %v3464_v58 }
 0x118   :  { %2177 = vmatpush.bf16.msra.mxu1 %v3365_v9  ;;  %2165 = vmatpush.bf16.msrb.mxu3 %v3293_v15  ;;  %v3445_v9 = vor.u32 %v3860_v5, %v3442_v7  ;;  %v3434_v15 = vld [vmem:[#allocation8 + $0x148] sm:$0xf0] }
 0x119   :  { %2129 = vmatmul.bf16.vlgmr.msrb.gmra.mxu1 %v1715_v55  ;;  %v3437_v17 = vor.u32 %v3858_v13, %v3434_v15  ;;  %v3514_v5 = vld [vmem:[#allocation8 + $0x1e8] sm:$0xf0]  ;;  %v3509_v15 = vor.u32 %v3876_v11, %v3506_v12  ;;  %v3897_v11 = vld [vmem:[#allocation10 + $0x78] sm:$0xff]  ;;  %v3884_v12 = vld [vmem:[#allocation10 + $0x10] sm:$0xff] }
 0x11a   :  { %2186 = vmatpush.bf16.msra.mxu2 %v3461_v0  ;;  %v3522_v0 = vld [vmem:[#allocation8 + $0x1f8] sm:$0xf0] }
 0x11c   :  { %2178 = vmatpush.bf16.msra.mxu1 %v3357_v56  ;;  %2166 = vmatpush.bf16.msrb.mxu3 %v3285_v8  ;;  %v3877_v56 = vld [vmem:[#allocation8 + $0x1d4] sm:$0xf0]  ;;  %v3854_v8 = vld [vmem:[#allocation8 + $0x124] sm:$0xf] }
 0x11d   :  { %v3505_v22 = vor.u32 %v3877_v56, %v3504_v20  ;;  %v3421_v33 = vor.u32 %v3854_v8, %v3418_v29 }
 0x11e   :  { %2187 = vmatpush.bf16.msra.mxu2 %v3453_v44  ;;  %v3525_v44 = vor.u32 %v3880_v62, %v3522_v0 }
 0x120   :  { %2179 = vmatpush.bf16.msra.mxu1 %v3349_v21  ;;  %2167 = vmatpush.bf16.msrb.mxu3 %v3277_v30  ;;  %v3873_v21 = vld [vmem:[#allocation8 + $0x1b4] sm:$0xf0]  ;;  %v3413_v30 = vor.u32 %v3852_v35, %v3410_v36  ;;  %v3466_v35 = vld [vmem:[#allocation8 + $0x188] sm:$0xf0] }
 0x121   :  { %v3489_v43 = vor.u32 %v3873_v21, %v3488_v34  ;;  %v3866_v21 = vld [vmem:[#allocation8 + $0x184] sm:$0xf] }
 0x122   :  { %v1533_v3 = vpop.f32.mrf.mxu1  ;;  %2188 = vmatpush.bf16.msra.mxu2 %v3445_v9  ;;  %v3469_v36 = vor.u32 %v3866_v21, %v3466_v35 }
 0x123   :  { %2168 = vmatmul.bf16.vlgmr.msrb.gmra.mxu3 %v4242_v40  ;;  %v1559_v37 = vpop.f32.mrf.mxu0  ;;  %v3881_v40 = vld [vmem:[#allocation8 + $0x1f4] sm:$0xf0]  ;;  %v1534_v45 = vadd.f32 %v1533_v3, %v352_v31 }
 0x124   :  { %2180 = vmatpush.bf16.msra.mxu1 %v3341_v54  ;;  %v3521_v6 = vor.u32 %v3881_v40, %v3520_v4  ;;  %v3871_v54 = vld [vmem:[#allocation8 + $0x1a4] sm:$0xf0] }
 0x125   :  { %v3481_v49 = vor.u32 %v3871_v54, %v3480_v47 }
 0x126   :  { %v1546_v10 = vpop.f32.mrf.mxu3  ;;  %2147 = vmatpush.bf16.msra.mxu0 %v3521_v6  ;;  %2189 = vmatpush.bf16.msra.mxu2 %v3437_v17 }
 0x127   :  { %v1547_v46 = vadd.f32 %v1546_v10, %v1534_v45 }
 0x128   :  { %2363 = vmatpush.bf16.msrb.mxu1 %v3897_v11 }
 0x129   :  { %2181 = vmatmul.bf16.vlgmr.msra.gmra.mxu1 %v1715_v55  ;;  %v1572_v18 = vpop.f32.mrf.mxu2  ;;  %v1560_v52 = vadd.f32 %v1559_v37, %v1547_v46  ;;  %v3869_v55 = vld [vmem:[#allocation8 + $0x194] sm:$0xf0]  ;;  %v3878_v37 = vld [vmem:[#allocation8 + $0x1e4] sm:$0xf] }
 0x12a   :  { %v1535_v19 = vpop.f32.mrf.mxu1  ;;  %2148 = vmatpush.bf16.msra.mxu0 %v3513_v14  ;;  %2190 = vmatpush.bf16.msra.mxu2 %v3429_v24  ;;  %v3473_v32 = vor.u32 %v3869_v55, %v3472_v53  ;;  %v3517_v9 = vor.u32 %v3878_v37, %v3514_v5  ;;  %v3870_v24 = vld [vmem:[#allocation8 + $0x1a4] sm:$0xf]  ;;  %v3889_v5 = vld [vmem:[#allocation10 + $0x38] sm:$0xff] }
 0x12b   :  { %v1561_v16 = vpop.f32.mrf.mxu0  ;;  %v1573_v57 = vadd.f32 %v1572_v18, %v1560_v52  ;;  %v3874_v18 = vld [vmem:[#allocation8 + $0x1c4] sm:$0xf]  ;;  %v3498_v19 = vld [vmem:[#allocation8 + $0x1c8] sm:$0xf0]  ;;  %v3485_v8 = vor.u32 %v3870_v24, %v3482_v25  ;;  %2350 = vmatpush.bf16.msra.mxu3 %v3889_v5  ;;  %v3905_v24 = vld [vmem:[#allocation11 + $0x38] sm:$0xff] }
 0x12c   :  { %v3501_v56 = vor.u32 %v3874_v18, %v3498_v19  ;;  %v3894_v18 = vld [vmem:[#allocation10 + $0x60] sm:$0xff]  ;;  %v3893_v19 = vld [vmem:[#allocation10 + $0x58] sm:$0xff] }
 0x12e   :  { %v1548_v27 = vpop.f32.mrf.mxu3  ;;  %2149 = vmatpush.bf16.msra.mxu0 %v3505_v22  ;;  %2191 = vmatpush.bf16.msra.mxu2 %v3421_v33  ;;  %v3872_v22 = vld [vmem:[#allocation8 + $0x1b4] sm:$0xf] }
 0x12f   :  { %v3493_v23 = vor.u32 %v3872_v22, %v3490_v61  ;;  %v3868_v27 = vld [vmem:[#allocation8 + $0x194] sm:$0xf]  ;;  %v3891_v22 = vld [vmem:[#allocation10 + $0x48] sm:$0xff] }
 0x131   :  { %v1574_v42 = vpop.f32.mrf.mxu2 }
 0x132   :  { %2150 = vmatpush.bf16.msra.mxu0 %v3497_v28  ;;  %2192 = vmatpush.bf16.msra.mxu2 %v3413_v30  ;;  %v3474_v28 = vld [vmem:[#allocation8 + $0x198] sm:$0xf0] }
 0x133   :  { %v1611_v41 = vpop.f32.mrf.mxu0  ;;  %v3477_v31 = vor.u32 %v3868_v27, %v3474_v28  ;;  %v3903_v27 = vld [vmem:[#allocation11 + $0x28] sm:$0xff] }
 0x136   :  { %2151 = vmatpush.bf16.msra.mxu0 %v3489_v43  ;;  %2193 = vmatpush.bf16.msra.mxu2 %v3405_v51 }
 0x13a   :  { %2152 = vmatpush.bf16.msra.mxu0 %v3481_v49 }
 0x13b   :  { %v1613_v63 = vpop.f32.mrf.mxu0 }
 0x13e   :  { %2153 = vmatpush.bf16.msra.mxu0 %v3473_v32 }
 0x140   :  { %v1585_v39 = vpop.f32.mrf.mxu1 }
 0x141   :  { %v1586_v1 = vadd.f32 %v1585_v39, %v1573_v57  ;;  %v1782_v57 = vld [vmem:[%s4264_s4] sm:$0x3] }
 0x142   :  { %2154 = vmatpush.bf16.msra.mxu0 %v3465_v60  ;;  %v1784_v58 = vperm.slane %v1782_v57, 0 }
 0x146   :  { %2199 = vmatpush.bf16.msrb.mxu0 %v3525_v44  ;;  %v1785_v44 = vperm.slane %v1782_v57, 1 }
 0x147   :  { %v1637_v2 = vpop.f32.mrf.mxu0 }
 0x148   :  { %v1598_v3 = vpop.f32.mrf.mxu3  ;;  %v1587_v40 = vpop.f32.mrf.mxu1 }
 0x149   :  { %v1599_v4 = vadd.f32 %v1598_v3, %v1586_v1  ;;  %v1624_v7 = vpop.f32.mrf.mxu2 }
 0x14a   :  { %2200 = vmatpush.bf16.msrb.mxu0 %v3517_v9  ;;  %v1625_v29 = vadd.f32 %v1624_v7, %v353_v26  ;;  %v3887_v7 = vld [vmem:[#allocation10 + $0x28] sm:$0xff]  ;;  %v3886_v9 = vld [vmem:[#allocation10 + $0x20] sm:$0xff]  ;;  %v3904_v26 = vld [vmem:[#allocation11 + $0x30] sm:$0xff] }
 0x14b   :  { %v1612_v6 = vadd.f32 %v1611_v41, %v1599_v4 }
 0x14c   :  { %v1638_v34 = vadd.f32 %v1637_v2, %v1625_v29 }
 0x14d   :  { %v1708_v10 = vmul.f32 0.2, %v1612_v6 }
 0x14e   :  { %2201 = vmatpush.bf16.msrb.mxu0 %v3509_v15  ;;  %v3895_v15 = vld [vmem:[#allocation10 + $0x68] sm:$0xff] }
 0x14f   :  { %v1712_v13 = vmax.f32 %v1612_v6, %v1708_v10  ;;  %v1639_v14 = vpop.f32.mrf.mxu0  ;;  %v3888_v6 = vld [vmem:[#allocation10 + $0x30] sm:$0xff]  ;;  %v3885_v10 = vld [vmem:[#allocation10 + $0x18] sm:$0xff] }
 0x150   :  { %v1600_v16 = vpop.f32.mrf.mxu3  ;;  %2351 = vmatpush.bf16.msra.mxu3 %v3888_v6  ;;  %v3883_v14 = vld [vmem:[#allocation10 + $0x8] sm:$0xff] }
 0x151   :  { %v1716_v17 = vpack.c.bf16 %v1712_v13, %v1712_v13  ;;  %v1626_v20 = vpop.f32.mrf.mxu2  ;;  %v3896_v13 = vld [vmem:[#allocation10 + $0x70] sm:$0xff] }
 0x152   :  { %2202 = vmatpush.bf16.msrb.mxu0 %v3501_v56  ;;  %2364 = vmatpush.bf16.msrb.mxu1 %v3896_v13  ;;  %v3892_v56 = vld [vmem:[#allocation10 + $0x50] sm:$0xff] }
 0x153   :  { %2142 = vmatmul.bf16.vlgmr.msrb.gmra.mxu2 %v1716_v17 }
 0x154   :  { %2352 = vmatpush.bf16.msra.mxu3 %v3887_v7  ;;  %2447 = vmatpush.bf16.msrb.mxu2 %v3905_v24 }
 0x156   :  { %2203 = vmatpush.bf16.msrb.mxu0 %v3493_v23  ;;  %2365 = vmatpush.bf16.msrb.mxu1 %v3895_v15  ;;  %v3890_v23 = vld [vmem:[#allocation10 + $0x40] sm:$0xff] }
 0x158   :  { %2353 = vmatpush.bf16.msra.mxu3 %v3886_v9  ;;  %2448 = vmatpush.bf16.msrb.mxu2 %v3904_v26 }
 0x15a   :  { %2204 = vmatpush.bf16.msrb.mxu0 %v3485_v8  ;;  %2366 = vmatpush.bf16.msrb.mxu1 %v3894_v18 }
 0x15c   :  { %2354 = vmatpush.bf16.msra.mxu3 %v3885_v10  ;;  %2449 = vmatpush.bf16.msrb.mxu2 %v3903_v27 }
 0x15e   :  { %2205 = vmatpush.bf16.msrb.mxu0 %v3477_v31  ;;  %2367 = vmatpush.bf16.msrb.mxu1 %v3893_v19 }
 0x160   :  { %v1650_v33 = vpop.f32.mrf.mxu1  ;;  %2355 = vmatpush.bf16.msra.mxu3 %v3884_v12 }
 0x161   :  { %v1651_v41 = vadd.f32 %v1650_v33, %v1638_v34 }
 0x162   :  { %2206 = vmatpush.bf16.msrb.mxu0 %v3469_v36  ;;  %2368 = vmatpush.bf16.msrb.mxu1 %v3892_v56 }
 0x163   :  { %2194 = vmatmul.bf16.vlgmr.msra.gmra.mxu2 %v1716_v17  ;;  %v3882_v17 = vld [vmem:[#allocation10] sm:$0xff] }
 0x164   :  { %2356 = vmatpush.bf16.msra.mxu3 %v3883_v14 }
 0x166   :  { %v1689_v43 = vpop.f32.mrf.mxu0  ;;  %2369 = vmatpush.bf16.msrb.mxu1 %v3891_v22 }
 0x168   :  { %v1663_v42 = vpop.f32.mrf.mxu3  ;;  %v1652_v38 = vpop.f32.mrf.mxu1  ;;  %2357 = vmatpush.bf16.msra.mxu3 %v3882_v17 }
 0x169   :  { %v1664_v45 = vadd.f32 %v1663_v42, %v1651_v41  ;;  %v1676_v30 = vpop.f32.mrf.mxu2 }
 0x16a   :  { %2370 = vmatpush.bf16.msrb.mxu1 %v3890_v23 }
 0x16b   :  { %v1677_v46 = vadd.f32 %v1676_v30, %v1664_v45  ;;  %v3902_v30 = vld [vmem:[#allocation11 + $0x20] sm:$0xff] }
 0x16c   :  { %2450 = vmatpush.bf16.msrb.mxu2 %v3902_v30 }
 0x16d   :  { %v1690_v48 = vadd.f32 %v1689_v43, %v1677_v46  ;;  %v3901_v46 = vld [vmem:[#allocation11 + $0x18] sm:$0xff] }
 0x16e   :  { %v1691_v54 = vpop.f32.mrf.mxu0 }
 0x16f   :  { %v3899_v54 = vld [vmem:[#allocation11 + $0x8] sm:$0xff] }
 0x170   :  { %v1665_v47 = vpop.f32.mrf.mxu3  ;;  %v1702_v49 = vpop.f32.mrf.mxu1  ;;  %2451 = vmatpush.bf16.msrb.mxu2 %v3901_v46 }
 0x171   :  { %v1703_v50 = vadd.f32 %v1702_v49, %v1690_v48  ;;  %v1678_v63 = vpop.f32.mrf.mxu2  ;;  %v3900_v47 = vld [vmem:[#allocation11 + $0x10] sm:$0xff]  ;;  %v3898_v48 = vld [vmem:[#allocation11] sm:$0xff] }
 0x173   :  { %v1709_v51 = vmul.f32 0.2, %v1703_v50 }
 0x174   :  { %2452 = vmatpush.bf16.msrb.mxu2 %v3900_v47 }
 0x175   :  { %v1713_v52 = vmax.f32 %v1703_v50, %v1709_v51  ;;  %v3919_v50 = vld [vmem:[%s4266_s6] ss:$0 sm:$0xff]  ;;  %s2469_s6 = sshll.u32 %s4269_s9, 4  ;;  %s2470_s6 = int_to_ptr.hbm [resolvable:$true] %s2469_s6 }
 0x177   :  { %v1717_v39 = vpack.c.bf16 %v1713_v52, %v1713_v52 }
 0x178   :  { %v1704_v53 = vpop.f32.mrf.mxu1  ;;  %2453 = vmatpush.bf16.msrb.mxu2 %v3899_v54 }
 0x179   :  { %2155 = vmatmul.bf16.vlgmr.msra.gmra.mxu0 %v1717_v39 }
 0x17c   :  { %2454 = vmatpush.bf16.msrb.mxu2 %v3898_v48 }
 0x186   :  { %v2117_v55 = vpop.f32.mrf.mxu3 }
 0x187   :  { %v2118_v59 = vadd.f32 %v2117_v55, %v1784_v58  ;;  %v3920_v58 = vld [vmem:[%s4268_s8] ss:$0 sm:$0xff] }
 0x189   :  { %2207 = vmatmul.bf16.vlgmr.msrb.gmra.mxu0 %v1717_v39 }
 0x18e   :  { %v2119_v32 = vpop.f32.mrf.mxu3 }
 0x196   :  { %v2130_v60 = vpop.f32.mrf.mxu1 }
 0x197   :  { %v2131_v62 = vadd.f32 %v2130_v60, %v2118_v59 }
 0x19e   :  { %v2132_v1 = vpop.f32.mrf.mxu1 }
 0x1a6   :  { %v2169_v0 = vpop.f32.mrf.mxu3  ;;  %v2182_v4 = vpop.f32.mrf.mxu1 }
 0x1a7   :  { %v2170_v3 = vadd.f32 %v2169_v0, %v1785_v44 }
 0x1a9   :  { %v2183_v40 = vadd.f32 %v2182_v4, %v2170_v3 }
 0x1ae   :  { %v2171_v2 = vpop.f32.mrf.mxu3  ;;  %v2184_v37 = vpop.f32.mrf.mxu1 }
 0x1d6   :  { %v2143_v16 = vpop.f32.mrf.mxu2 }
 0x1d7   :  { %v2144_v8 = vadd.f32 %v2143_v16, %v2131_v62 }
 0x1de   :  { %v2145_v20 = vpop.f32.mrf.mxu2 }
 0x1e6   :  { %v2195_v61 = vpop.f32.mrf.mxu2 }
 0x1e7   :  { %v2196_v35 = vadd.f32 %v2195_v61, %v2183_v40 }
 0x1ee   :  { %v2197_v25 = vpop.f32.mrf.mxu2 }
 0x1f6   :  { %v2156_v28 = vpop.f32.mrf.mxu0 }
 0x1f7   :  { %v2157_v29 = vadd.f32 %v2156_v28, %v2144_v8 }
 0x1f9   :  { %v2212_v31 = vmul.f32 0.2, %v2157_v29 }
 0x1fb   :  { %v2214_v33 = vmax.f32 %v2157_v29, %v2212_v31 }
 0x1fd   :  { %v2216_v34 = vpack.c.bf16 %v2214_v33, %v2214_v33 }
 0x1fe   :  { %v2158_v21 = vpop.f32.mrf.mxu0 }
 0x1ff   :  { %2358 = vmatmul.bf16.vlgmr.msra.gmra.mxu3 %v2216_v34 }
 0x206   :  { %v2208_v36 = vpop.f32.mrf.mxu0 }
 0x207   :  { %v2209_v41 = vadd.f32 %v2208_v36, %v2196_v35 }
 0x209   :  { %v2213_v42 = vmul.f32 0.2, %v2209_v41 }
 0x20b   :  { %v2215_v43 = vmax.f32 %v2209_v41, %v2213_v42 }
 0x20d   :  { %v2217_v45 = vpack.c.bf16 %v2215_v43, %v2215_v43 }
 0x20e   :  { %v2210_v38 = vpop.f32.mrf.mxu0 }
 0x20f   :  { %2371 = vmatmul.bf16.vlgmr.msrb.gmra.mxu1 %v2217_v45 }
 0x282   :  { %v2359_v49 = vpop.f32.mrf.mxu3 }
 0x283   :  { %v2360_v51 = vadd.f32 %v3919_v50, %v2359_v49 }
 0x28a   :  { %v2361_v63 = vpop.f32.mrf.mxu3 }
 0x28c   :  { %v2372_v52 = vpop.f32.mrf.mxu1 }
 0x28d   :  { %v2373_v39 = vadd.f32 %v2372_v52, %v2360_v51 }
 0x28f   :  { %v2376_v53 = vmul.f32 0.2, %v2373_v39 }
 0x291   :  { %v2377_v55 = vmax.f32 %v2373_v39, %v2376_v53 }
 0x293   :  { %v2378_v32 = vpack.c.bf16 %v2377_v55, %v2377_v55 }
 0x294   :  { %v2374_v57 = vpop.f32.mrf.mxu1 }
 0x295   :  { %2455 = vmatmul.bf16.vlgmr.msrb.gmra.mxu2 %v2378_v32 }
 0x318   :  { %v2456_v59 = vpop.f32.mrf.mxu2 }
 0x319   :  { %v2457_v60 = vadd.f32 %v3920_v58, %v2456_v59 }
 0x31b   :  { %v2460_v62 = vpack.c.bf16 %v2457_v60, %v2457_v60 }
 0x31d   :  { %2461 = vst [vmem:[#allocation13] sm:$0x1] %v2460_v62 }
 0x31e   :  { %2472 = dma.vmem_to_hbm [thread:$0]  %s2468_s23, 16, %s2470_s6, [#allocation4]  }
 0x320   :  { %v2458_v0 = vpop.f32.mrf.mxu2 }
 0x321   :  { %4097 = dma.done.wait [#allocation4], 16  }
 0x322   :  { %4098 = vsyncadd [#allocation4], 4294967280 }
 0x323   :  { %2477 = vsyncpa [#allocation3], 1 }
 0x324   :  { %2478 = vsyncpa [#allocation6], 1 }
 0x325   :  { %2479 = vsyncpa [#allocation9], 1 }
 0x326   :  { %2480 = vsyncpa [#allocation12], 1 }
 0x327   :  { %2481 = vsyncpa [#allocation4], 1 }

</bundles_post_ra>
